<compile_context>
chip_gen: v7x
topology: tpu7x:2x2x1
jax: 0.10.0
libtpu: 0.0.40
codegen_flags: <defaults>
</compile_context>

<pallas_src>
import functools

import jax
import jax.numpy as jnp
from jax.experimental import pallas as pl
from jax.experimental.pallas import tpu as pltpu

_vmem_limit_cache = []


def _vmem_limit_bytes():
    """~3/4 of physical VMEM (cap 96 MiB); falls back to 32 MiB if query fails."""
    if not _vmem_limit_cache:
        try:
            cap = int(pltpu.get_tpu_info().vmem_capacity_bytes)
            _vmem_limit_cache.append(min(cap * 3 // 4, 96 * 1024 * 1024))
        except Exception:  # noqa: BLE001 - any failure -> conservative default
            _vmem_limit_cache.append(32 * 1024 * 1024)
    return _vmem_limit_cache[0]


def _compiler_params(semantics):
    return pltpu.CompilerParams(dimension_semantics=semantics,
                                vmem_limit_bytes=_vmem_limit_bytes())


def _full_spec(shape):
    # Constant-index (fully resident) operand.  NOTE: still double-buffered by default;
    # the large FFN weights are streamed in chunks instead (see post_block), so the
    # remaining resident weights (D x D out-proj + vectors) are small.
    return pl.BlockSpec(shape, lambda *_: (0,) * len(shape))


def _pick_block_rows(rows, cap=512):
    """Largest divisor of rows that is a multiple of 8 (or == rows) and <= cap."""
    for b in range(min(rows, cap), 0, -1):
        if rows % b == 0 and (b % 8 == 0 or b == rows):
            return b
    return rows


def _pick_ff_chunk(dff, cap=512):
    """Largest divisor of dff that is a multiple of 128 (or == dff) and <= cap."""
    for c in range(min(dff, cap), 0, -1):
        if dff % c == 0 and (c % 128 == 0 or c == dff):
            return c
    return dff


# ------------------- kernel 1: fused Q|K|V projection, one (rows,D)@(D,3D) GEMM ---------------
def qkv_kernel(x_ref, w_ref, b_ref, o_ref):
    o_ref[...] = (jnp.dot(x_ref[...], w_ref[...], preferred_element_type=jnp.float32)
                  + b_ref[...]).astype(o_ref.dtype)


def qkv_proj(x2d_bf16, p, block_rows):
    rows, D = x2d_bf16.shape
    three_d = p["wqkvT"].shape[1]
    ce = pl.CostEstimate(flops=2 * rows * D * three_d, transcendentals=0,
                         bytes_accessed=rows * D * 2 + D * three_d * 2
                                        + three_d * 4 + rows * three_d * 2)
    return pl.pallas_call(
        qkv_kernel,
        out_shape=jax.ShapeDtypeStruct((rows, three_d), jnp.bfloat16),
        grid=(rows // block_rows,),
        in_specs=[pl.BlockSpec((block_rows, D), lambda r: (r, 0)),
                  _full_spec((D, three_d)),
                  _full_spec((1, three_d))],
        out_specs=pl.BlockSpec((block_rows, three_d), lambda r: (r, 0)),
        compiler_params=_compiler_params(("parallel",)),
        cost_estimate=ce,
    )(x2d_bf16, p["wqkvT"], p["bqkv"])


# ------------------- kernel 2: attention core, per-batch block, in-kernel head loop -----------
def mha_kernel(qkv_ref, bias_ref, o_ref, *, num_heads, head_dim, d_model):
    slab = qkv_ref[...]                       # (S, 3D) bf16: [ q | k | v ] along lanes
    bias = bias_ref[...]                      # (1, S) f32 key-padding bias
    ctxs = []
    for h in range(num_heads):                # static unroll; one (S,S) score tile live at a time
        lo = h * head_dim
        q = slab[:, lo:lo + head_dim]                                   # (S, hd)
        k = slab[:, d_model + lo:d_model + lo + head_dim]
        v = slab[:, 2 * d_model + lo:2 * d_model + lo + head_dim]
        s = jax.lax.dot_general(q, k, (((1,), (1,)), ((), ())),
                                preferred_element_type=jnp.float32)     # (S, S)
        s = s + bias
        s = s - jnp.max(s, axis=-1, keepdims=True)
        pexp = jnp.exp(s)
        pexp = pexp * pl.reciprocal(jnp.sum(pexp, axis=-1, keepdims=True), approx=True)
        ctxs.append(jnp.dot(pexp.astype(slab.dtype), v,
                            preferred_element_type=jnp.float32))        # (S, hd)
    # single lane-dense store of the merged heads
    o_ref[...] = jnp.concatenate(ctxs, axis=-1).astype(o_ref.dtype)


def mha_core(qkv3d, bias, num_heads, d_model):
    B, S, _ = qkv3d.shape
    hd = d_model // num_heads
    kernel = functools.partial(mha_kernel, num_heads=num_heads, head_dim=hd, d_model=d_model)
    ce = pl.CostEstimate(flops=4 * B * num_heads * S * S * hd,
                         transcendentals=B * num_heads * S * S,
                         bytes_accessed=B * S * 3 * d_model * 2 + B * S * d_model * 2 + B * S * 4)
    # TODO(synk): flash-style KV tiling for very long S (current kernel holds one (S,S) tile).
    return pl.pallas_call(
        kernel,
        out_shape=jax.ShapeDtypeStruct((B, S, d_model), jnp.bfloat16),
        grid=(B,),
        in_specs=[pl.BlockSpec((None, S, 3 * d_model), lambda b: (b, 0, 0)),
                  pl.BlockSpec((None, 1, S), lambda b: (b, 0, 0))],
        out_specs=pl.BlockSpec((None, S, d_model), lambda b: (b, 0, 0)),
        compiler_params=_compiler_params(("parallel",)),
        cost_estimate=ce,
    )(qkv3d, bias)


# ------------------- kernel 3: out-proj + LN1 + ReLU FFN (Dff-chunked) + LN2 ------------------
def post_kernel(x_ref, ctx_ref, woT_ref, bo_ref, g1_ref, be1_ref,
                w1T_ref, b1_ref, w2T_ref, b2_ref, g2_ref, be2_ref,
                o_ref, y_sc, acc_sc):
    c = pl.program_id(1)
    nc = pl.num_programs(1)

    @pl.when(c == 0)
    def _():
        # out-projection + residual + LayerNorm 1 (post-norm); cached in VMEM scratch
        attn = jnp.dot(ctx_ref[...], woT_ref[...],
                       preferred_element_type=jnp.float32) + bo_ref[...]
        y = x_ref[...] + attn
        mu = jnp.mean(y, axis=-1, keepdims=True)
        var = jnp.mean((y - mu) ** 2, axis=-1, keepdims=True)
        y_sc[...] = (y - mu) * jax.lax.rsqrt(var + 1e-5) * g1_ref[...] + be1_ref[...]
        acc_sc[...] = jnp.zeros_like(acc_sc)

    # feed-forward: stream a Dff chunk  (Linear -> ReLU -> Linear, accumulated)
    h = jnp.dot(y_sc[...].astype(jnp.bfloat16), w1T_ref[...],
                preferred_element_type=jnp.float32) + b1_ref[...]
    h = jnp.maximum(h, 0.0)
    acc_sc[...] += jnp.dot(h.astype(jnp.bfloat16), w2T_ref[...],
                           preferred_element_type=jnp.float32)

    @pl.when(c == nc - 1)
    def _():
        # residual + LayerNorm 2
        z = y_sc[...] + acc_sc[...] + b2_ref[...]
        mu2 = jnp.mean(z, axis=-1, keepdims=True)
        var2 = jnp.mean((z - mu2) ** 2, axis=-1, keepdims=True)
        o_ref[...] = ((z - mu2) * jax.lax.rsqrt(var2 + 1e-5)
                      * g2_ref[...] + be2_ref[...]).astype(o_ref.dtype)


def post_block(x2d, ctx2d, p, block_rows, ff_chunk):
    rows, D = x2d.shape
    dff = p["w1T"].shape[1]
    n_chunks = dff // ff_chunk
    row_spec = pl.BlockSpec((block_rows, D), lambda r, c: (r, 0))
    ce = pl.CostEstimate(flops=2 * rows * D * D + 4 * rows * D * dff, transcendentals=0,
                         bytes_accessed=rows * D * 4 + rows * D * 2
                                        + (D * D + 2 * D * dff) * 2 + rows * D * 4)
    return pl.pallas_call(
        post_kernel,
        out_shape=jax.ShapeDtypeStruct((rows, D), x2d.dtype),
        grid=(rows // block_rows, n_chunks),
        in_specs=[row_spec,                                     # x (f32 residual stream)
                  row_spec,                                     # ctx (bf16 merged heads)
                  _full_spec((D, D)), _full_spec((1, D)),       # woT, bo
                  _full_spec((1, D)), _full_spec((1, D)),       # g1, be1
                  pl.BlockSpec((D, ff_chunk), lambda r, c: (0, c)),   # w1T chunk
                  pl.BlockSpec((1, ff_chunk), lambda r, c: (0, c)),   # b1 chunk
                  pl.BlockSpec((ff_chunk, D), lambda r, c: (c, 0)),   # w2T chunk
                  _full_spec((1, D)), _full_spec((1, D)), _full_spec((1, D))],  # b2, g2, be2
        out_specs=row_spec,
        scratch_shapes=[pltpu.VMEM((block_rows, D), jnp.float32),   # y (post-LN1)
                        pltpu.VMEM((block_rows, D), jnp.float32)],  # FFN accumulator
        compiler_params=_compiler_params(("parallel", "arbitrary")),
        cost_estimate=ce,
    )(x2d, ctx2d, p["woT"], p["bo"], p["g1"], p["be1"],
      p["w1T"], p["b1"], p["w2T"], p["b2"], p["g2"], p["be2"])


# ---------------------------------- layer / module forward ------------------------------------
def encoder_layer(x, bias, p, num_heads, block_rows, ff_chunk):
    B, S, D = x.shape
    rows = B * S
    x2d = x.reshape(rows, D)
    # cast once in XLA; kernels consume bf16, residual stays f32
    qkv = qkv_proj(x2d.astype(jnp.bfloat16), p, block_rows)            # (rows, 3D) bf16
    ctx = mha_core(qkv.reshape(B, S, 3 * D), bias, num_heads, D)       # (B, S, D) bf16
    out2d = post_block(x2d, ctx.reshape(rows, D), p, block_rows, ff_chunk)
    return out2d.reshape(B, S, D)


def trans_layer_forward(x, mask, layer_params, num_heads):
    """Equivalent of TransLayer.forward(x, mask). mask: True = valid token."""
    if not layer_params:             # num_layers == 0 -> identity (no encoder attr)
        return x
    B, S, D = x.shape
    key_pad = mask == False          # noqa: E712  True = padded key position (ignored)
    # PyTorch adds -inf at masked keys; large finite value keeps fully-masked rows NaN-free.
    bias = jnp.where(key_pad, -1e9, 0.0).astype(jnp.float32)[:, None, :]   # (B, 1, S)
    rows = B * S
    block_rows = _pick_block_rows(rows)
    ff_chunk = _pick_ff_chunk(layer_params[0]["w1T"].shape[1])
    out = x
    for p in layer_params:
        out = encoder_layer(out, bias, p, num_heads, block_rows, ff_chunk)
    return out


def init_params(key, d_model, num_layers, num_heads, ffn_mul):
    """PyTorch-layout randoms, pre-transposed / concatenated / scale-folded / bf16-cast."""
    dff = d_model * ffn_mul
    hd = d_model // num_heads
    scale = 1.0 / (hd ** 0.5)
    params = []
    for i in range(num_layers):
        ks = jax.random.split(jax.random.fold_in(key, i), 4)
        sc = 0.05
        wqkv = jax.random.normal(ks[0], (3 * d_model, d_model), jnp.float32) * sc
        wo = jax.random.normal(ks[1], (d_model, d_model), jnp.float32) * sc
        w1 = jax.random.normal(ks[2], (dff, d_model), jnp.float32) * sc
        w2 = jax.random.normal(ks[3], (d_model, dff), jnp.float32) * sc
        wq, wk, wv = wqkv[:d_model], wqkv[d_model:2 * d_model], wqkv[2 * d_model:]
        # fused q|k|v projection weight; 1/sqrt(hd) folded into the q columns
        wqkvT = jnp.concatenate([wq.T * scale, wk.T, wv.T], axis=1).astype(jnp.bfloat16)
        # (if q bias were nonzero it would need the same scale folding; zeros here)
        params.append(dict(
            wqkvT=wqkvT,
            bqkv=jnp.zeros((1, 3 * d_model), jnp.float32),
            woT=wo.T.astype(jnp.bfloat16),
            bo=jnp.zeros((1, d_model), jnp.float32),
            g1=jnp.ones((1, d_model), jnp.float32),
            be1=jnp.zeros((1, d_model), jnp.float32),
            w1T=w1.T.astype(jnp.bfloat16),
            b1=jnp.zeros((1, dff), jnp.float32),
            w2T=w2.T.astype(jnp.bfloat16),
            b2=jnp.zeros((1, d_model), jnp.float32),
            g2=jnp.ones((1, d_model), jnp.float32),
            be2=jnp.zeros((1, d_model), jnp.float32),
        ))
    return params


if __name__ == "__main__":
    B, S, D = 2, 8, 32
    num_heads, num_layers, ffn_mul = 4, 2, 4

    root = jax.random.PRNGKey(0)
    kx, kp = jax.random.split(root)
    x = jax.random.normal(kx, (B, S, D), jnp.float32)
    # True = valid token (second sequence has 5 valid, 3 padded positions)
    lengths = jnp.array([8, 5], dtype=jnp.int32)
    mask = jnp.arange(S)[None, :] < lengths[:, None]

    params = init_params(kp, D, num_layers, num_heads, ffn_mul)

    fwd = jax.jit(functools.partial(trans_layer_forward, num_heads=num_heads))
    out = fwd(x, mask, params)
    out = jax.block_until_ready(out)
    assert out.shape == (B, S, D)
    assert bool(jnp.all(jnp.isfinite(out)))
    print("KERNEL_OK")
</pallas_src>

<mosaic_0001>
module attributes {stable_mosaic.version = 11 : i64} {
  func.func @qkv_kernel(%arg0: i32, %arg1: memref<16x32xbf16, #tpu.memory_space<vmem>>, %arg2: memref<32x96xbf16, #tpu.memory_space<vmem>>, %arg3: memref<1x96xf32, #tpu.memory_space<vmem>>, %arg4: memref<16x96xbf16, #tpu.memory_space<vmem>>) attributes {dimension_semantics = [#tpu.dimension_semantics<parallel>], iteration_bounds = array<i64: 1>, scalar_prefetch = 0 : i64, scratch_operands = 0 : i64, tpu.core_type = #tpu.core_type<tc>, window_params = [{transform_indices = @transform_0, window_bounds = array<i64: 16, 32>}, {pipeline_mode = #tpu.pipeline_mode<synchronous>, transform_indices = @transform_1, window_bounds = array<i64: 32, 96>}, {pipeline_mode = #tpu.pipeline_mode<synchronous>, transform_indices = @transform_2, window_bounds = array<i64: 1, 96>}, {transform_indices = @transform_3, window_bounds = array<i64: 16, 96>}]} {
    %c0 = arith.constant 0 : index
    %c0_0 = arith.constant 0 : index
    %0 = vector.load %arg1[%c0, %c0_0] : memref<16x32xbf16, #tpu.memory_space<vmem>>, vector<16x32xbf16>
    %c0_1 = arith.constant 0 : index
    %c0_2 = arith.constant 0 : index
    %1 = vector.load %arg2[%c0_1, %c0_2] : memref<32x96xbf16, #tpu.memory_space<vmem>>, vector<32x96xbf16>
    %cst = arith.constant dense<0.000000e+00> : vector<16x96xf32>
    %2 = tpu.matmul %0, %1, %cst {dimension_numbers = #tpu.dot_dimension_numbers<[1], [0], [0], [1], [0, 0, 1, 1], [], []>} : vector<16x32xbf16>, vector<32x96xbf16>, vector<16x96xf32> -> vector<16x96xf32>
    %c0_3 = arith.constant 0 : index
    %c0_4 = arith.constant 0 : index
    %3 = vector.load %arg3[%c0_3, %c0_4] : memref<1x96xf32, #tpu.memory_space<vmem>>, vector<1x96xf32>
    %4 = vector.broadcast %3 : vector<1x96xf32> to vector<16x96xf32>
    %5 = arith.addf %2, %4 : vector<16x96xf32>
    %6 = arith.truncf %5 : vector<16x96xf32> to vector<16x96xbf16>
    %c0_5 = arith.constant 0 : index
    %c0_6 = arith.constant 0 : index
    %7 = vector.load %arg4[%c0_5, %c0_6] : memref<16x96xbf16, #tpu.memory_space<vmem>>, vector<16x96xbf16>
    tpu.vector_store %arg4[%c0_5, %c0_6], %6 {strides = array<i32>} : memref<16x96xbf16, #tpu.memory_space<vmem>>, vector<16x96xbf16>,
    return
  }
  func.func @transform_0(%arg0: i32) -> (i32, i32) {
    %c0_i32 = arith.constant 0 : i32
    %c0_i32_0 = arith.constant 0 : i32
    return %arg0, %c0_i32 : i32, i32
  }
  func.func @transform_1(%arg0: i32) -> (i32, i32) {
    %c0_i32 = arith.constant 0 : i32
    %c0_i32_0 = arith.constant 0 : i32
    %c0_i32_1 = arith.constant 0 : i32
    return %c0_i32, %c0_i32_0 : i32, i32
  }
  func.func @transform_2(%arg0: i32) -> (i32, i32) {
    %c0_i32 = arith.constant 0 : i32
    %c0_i32_0 = arith.constant 0 : i32
    %c0_i32_1 = arith.constant 0 : i32
    return %c0_i32, %c0_i32_0 : i32, i32
  }
  func.func @transform_3(%arg0: i32) -> (i32, i32) {
    %c0_i32 = arith.constant 0 : i32
    %c0_i32_0 = arith.constant 0 : i32
    return %arg0, %c0_i32 : i32, i32
  }
}

module attributes {stable_mosaic.version = 11 : i64} {
  func.func @mha_kernel(%arg0: i32, %arg1: memref<1x8x96xbf16, #tpu.memory_space<vmem>>, %arg2: memref<1x1x8xf32, #tpu.memory_space<vmem>>, %arg3: memref<1x8x32xbf16, #tpu.memory_space<vmem>>) attributes {dimension_semantics = [#tpu.dimension_semantics<parallel>], iteration_bounds = array<i64: 2>, scalar_prefetch = 0 : i64, scratch_operands = 0 : i64, tpu.core_type = #tpu.core_type<tc>, window_params = [{transform_indices = @transform_0, window_bounds = array<i64: 1, 8, 96>}, {transform_indices = @transform_1, window_bounds = array<i64: 1, 1, 8>}, {transform_indices = @transform_2, window_bounds = array<i64: 1, 8, 32>}]} {
    %c0 = arith.constant 0 : index
    %c0_0 = arith.constant 0 : index
    %c0_1 = arith.constant 0 : index
    %0 = vector.load %arg1[%c0, %c0_0, %c0_1] : memref<1x8x96xbf16, #tpu.memory_space<vmem>>, vector<1x8x96xbf16>
    %1 = vector.shape_cast %0 : vector<1x8x96xbf16> to vector<8x96xbf16>
    %c0_2 = arith.constant 0 : index
    %c0_3 = arith.constant 0 : index
    %c0_4 = arith.constant 0 : index
    %2 = vector.load %arg2[%c0_2, %c0_3, %c0_4] : memref<1x1x8xf32, #tpu.memory_space<vmem>>, vector<1x1x8xf32>
    %3 = vector.shape_cast %2 : vector<1x1x8xf32> to vector<1x8xf32>
    %4 = vector.extract_strided_slice %1 {offsets = [0, 0], sizes = [8, 8], strides = [1, 1]} : vector<8x96xbf16> to vector<8x8xbf16>
    %5 = vector.extract_strided_slice %1 {offsets = [0, 32], sizes = [8, 8], strides = [1, 1]} : vector<8x96xbf16> to vector<8x8xbf16>
    %6 = vector.extract_strided_slice %1 {offsets = [0, 64], sizes = [8, 8], strides = [1, 1]} : vector<8x96xbf16> to vector<8x8xbf16>
    %cst = arith.constant dense<0.000000e+00> : vector<8x8xf32>
    %7 = tpu.matmul %4, %5, %cst {dimension_numbers = #tpu.dot_dimension_numbers<[1], [1], [0], [0], [0, 0, 1, 0], [], []>} : vector<8x8xbf16>, vector<8x8xbf16>, vector<8x8xf32> -> vector<8x8xf32>
    %8 = vector.broadcast %3 : vector<1x8xf32> to vector<8x8xf32>
    %9 = arith.addf %7, %8 : vector<8x8xf32>
    %cst_5 = arith.constant dense<0xFF800000> : vector<8xf32>
    %10 = vector.multi_reduction <maximumf>, %9, %cst_5 [1] : vector<8x8xf32> to vector<8xf32>
    %11 = vector.shape_cast %10 : vector<8xf32> to vector<8x1xf32>
    %12 = vector.broadcast %11 : vector<8x1xf32> to vector<8x8xf32>
    %13 = arith.subf %9, %12 : vector<8x8xf32>
    %14 = math.exp %13 : vector<8x8xf32>
    %cst_6 = arith.constant dense<0.000000e+00> : vector<8xf32>
    %15 = vector.multi_reduction <add>, %14, %cst_6 [1] : vector<8x8xf32> to vector<8xf32>
    %16 = vector.shape_cast %15 : vector<8xf32> to vector<8x1xf32>
    %17 = tpu.reciprocal %16 {approx = true} : vector<8x1xf32> -> vector<8x1xf32>
    %18 = vector.broadcast %17 : vector<8x1xf32> to vector<8x8xf32>
    %19 = arith.mulf %14, %18 : vector<8x8xf32>
    %20 = arith.truncf %19 : vector<8x8xf32> to vector<8x8xbf16>
    %cst_7 = arith.constant dense<0.000000e+00> : vector<8x8xf32>
    %21 = tpu.matmul %20, %6, %cst_7 {dimension_numbers = #tpu.dot_dimension_numbers<[1], [0], [0], [1], [0, 0, 1, 1], [], []>} : vector<8x8xbf16>, vector<8x8xbf16>, vector<8x8xf32> -> vector<8x8xf32>
    %22 = vector.extract_strided_slice %1 {offsets = [0, 8], sizes = [8, 8], strides = [1, 1]} : vector<8x96xbf16> to vector<8x8xbf16>
    %23 = vector.extract_strided_slice %1 {offsets = [0, 40], sizes = [8, 8], strides = [1, 1]} : vector<8x96xbf16> to vector<8x8xbf16>
    %24 = vector.extract_strided_slice %1 {offsets = [0, 72], sizes = [8, 8], strides = [1, 1]} : vector<8x96xbf16> to vector<8x8xbf16>
    %cst_8 = arith.constant dense<0.000000e+00> : vector<8x8xf32>
    %25 = tpu.matmul %22, %23, %cst_8 {dimension_numbers = #tpu.dot_dimension_numbers<[1], [1], [0], [0], [0, 0, 1, 0], [], []>} : vector<8x8xbf16>, vector<8x8xbf16>, vector<8x8xf32> -> vector<8x8xf32>
    %26 = vector.broadcast %3 : vector<1x8xf32> to vector<8x8xf32>
    %27 = arith.addf %25, %26 : vector<8x8xf32>
    %cst_9 = arith.constant dense<0xFF800000> : vector<8xf32>
    %28 = vector.multi_reduction <maximumf>, %27, %cst_9 [1] : vector<8x8xf32> to vector<8xf32>
    %29 = vector.shape_cast %28 : vector<8xf32> to vector<8x1xf32>
    %30 = vector.broadcast %29 : vector<8x1xf32> to vector<8x8xf32>
    %31 = arith.subf %27, %30 : vector<8x8xf32>
    %32 = math.exp %31 : vector<8x8xf32>
    %cst_10 = arith.constant dense<0.000000e+00> : vector<8xf32>
    %33 = vector.multi_reduction <add>, %32, %cst_10 [1] : vector<8x8xf32> to vector<8xf32>
    %34 = vector.shape_cast %33 : vector<8xf32> to vector<8x1xf32>
    %35 = tpu.reciprocal %34 {approx = true} : vector<8x1xf32> -> vector<8x1xf32>
    %36 = vector.broadcast %35 : vector<8x1xf32> to vector<8x8xf32>
    %37 = arith.mulf %32, %36 : vector<8x8xf32>
    %38 = arith.truncf %37 : vector<8x8xf32> to vector<8x8xbf16>
    %cst_11 = arith.constant dense<0.000000e+00> : vector<8x8xf32>
    %39 = tpu.matmul %38, %24, %cst_11 {dimension_numbers = #tpu.dot_dimension_numbers<[1], [0], [0], [1], [0, 0, 1, 1], [], []>} : vector<8x8xbf16>, vector<8x8xbf16>, vector<8x8xf32> -> vector<8x8xf32>
    %40 = vector.extract_strided_slice %1 {offsets = [0, 16], sizes = [8, 8], strides = [1, 1]} : vector<8x96xbf16> to vector<8x8xbf16>
    %41 = vector.extract_strided_slice %1 {offsets = [0, 48], sizes = [8, 8], strides = [1, 1]} : vector<8x96xbf16> to vector<8x8xbf16>
    %42 = vector.extract_strided_slice %1 {offsets = [0, 80], sizes = [8, 8], strides = [1, 1]} : vector<8x96xbf16> to vector<8x8xbf16>
    %cst_12 = arith.constant dense<0.000000e+00> : vector<8x8xf32>
    %43 = tpu.matmul %40, %41, %cst_12 {dimension_numbers = #tpu.dot_dimension_numbers<[1], [1], [0], [0], [0, 0, 1, 0], [], []>} : vector<8x8xbf16>, vector<8x8xbf16>, vector<8x8xf32> -> vector<8x8xf32>
    %44 = vector.broadcast %3 : vector<1x8xf32> to vector<8x8xf32>
    %45 = arith.addf %43, %44 : vector<8x8xf32>
    %cst_13 = arith.constant dense<0xFF800000> : vector<8xf32>
    %46 = vector.multi_reduction <maximumf>, %45, %cst_13 [1] : vector<8x8xf32> to vector<8xf32>
    %47 = vector.shape_cast %46 : vector<8xf32> to vector<8x1xf32>
    %48 = vector.broadcast %47 : vector<8x1xf32> to vector<8x8xf32>
    %49 = arith.subf %45, %48 : vector<8x8xf32>
    %50 = math.exp %49 : vector<8x8xf32>
    %cst_14 = arith.constant dense<0.000000e+00> : vector<8xf32>
    %51 = vector.multi_reduction <add>, %50, %cst_14 [1] : vector<8x8xf32> to vector<8xf32>
    %52 = vector.shape_cast %51 : vector<8xf32> to vector<8x1xf32>
    %53 = tpu.reciprocal %52 {approx = true} : vector<8x1xf32> -> vector<8x1xf32>
    %54 = vector.broadcast %53 : vector<8x1xf32> to vector<8x8xf32>
    %55 = arith.mulf %50, %54 : vector<8x8xf32>
    %56 = arith.truncf %55 : vector<8x8xf32> to vector<8x8xbf16>
    %cst_15 = arith.constant dense<0.000000e+00> : vector<8x8xf32>
    %57 = tpu.matmul %56, %42, %cst_15 {dimension_numbers = #tpu.dot_dimension_numbers<[1], [0], [0], [1], [0, 0, 1, 1], [], []>} : vector<8x8xbf16>, vector<8x8xbf16>, vector<8x8xf32> -> vector<8x8xf32>
    %58 = vector.extract_strided_slice %1 {offsets = [0, 24], sizes = [8, 8], strides = [1, 1]} : vector<8x96xbf16> to vector<8x8xbf16>
    %59 = vector.extract_strided_slice %1 {offsets = [0, 56], sizes = [8, 8], strides = [1, 1]} : vector<8x96xbf16> to vector<8x8xbf16>
    %60 = vector.extract_strided_slice %1 {offsets = [0, 88], sizes = [8, 8], strides = [1, 1]} : vector<8x96xbf16> to vector<8x8xbf16>
    %cst_16 = arith.constant dense<0.000000e+00> : vector<8x8xf32>
    %61 = tpu.matmul %58, %59, %cst_16 {dimension_numbers = #tpu.dot_dimension_numbers<[1], [1], [0], [0], [0, 0, 1, 0], [], []>} : vector<8x8xbf16>, vector<8x8xbf16>, vector<8x8xf32> -> vector<8x8xf32>
    %62 = vector.broadcast %3 : vector<1x8xf32> to vector<8x8xf32>
    %63 = arith.addf %61, %62 : vector<8x8xf32>
    %cst_17 = arith.constant dense<0xFF800000> : vector<8xf32>
    %64 = vector.multi_reduction <maximumf>, %63, %cst_17 [1] : vector<8x8xf32> to vector<8xf32>
    %65 = vector.shape_cast %64 : vector<8xf32> to vector<8x1xf32>
    %66 = vector.broadcast %65 : vector<8x1xf32> to vector<8x8xf32>
    %67 = arith.subf %63, %66 : vector<8x8xf32>
    %68 = math.exp %67 : vector<8x8xf32>
    %cst_18 = arith.constant dense<0.000000e+00> : vector<8xf32>
    %69 = vector.multi_reduction <add>, %68, %cst_18 [1] : vector<8x8xf32> to vector<8xf32>
    %70 = vector.shape_cast %69 : vector<8xf32> to vector<8x1xf32>
    %71 = tpu.reciprocal %70 {approx = true} : vector<8x1xf32> -> vector<8x1xf32>
    %72 = vector.broadcast %71 : vector<8x1xf32> to vector<8x8xf32>
    %73 = arith.mulf %68, %72 : vector<8x8xf32>
    %74 = arith.truncf %73 : vector<8x8xf32> to vector<8x8xbf16>
    %cst_19 = arith.constant dense<0.000000e+00> : vector<8x8xf32>
    %75 = tpu.matmul %74, %60, %cst_19 {dimension_numbers = #tpu.dot_dimension_numbers<[1], [0], [0], [1], [0, 0, 1, 1], [], []>} : vector<8x8xbf16>, vector<8x8xbf16>, vector<8x8xf32> -> vector<8x8xf32>
    %76 = tpu.concatenate %21, %39, %57, %75 in 1 : vector<8x8xf32>, vector<8x8xf32>, vector<8x8xf32>, vector<8x8xf32> -> vector<8x32xf32>
    %77 = arith.truncf %76 : vector<8x32xf32> to vector<8x32xbf16>
    %c0_20 = arith.constant 0 : index
    %c0_21 = arith.constant 0 : index
    %c0_22 = arith.constant 0 : index
    %78 = vector.load %arg3[%c0_20, %c0_21, %c0_22] : memref<1x8x32xbf16, #tpu.memory_space<vmem>>, vector<1x8x32xbf16>
    %79 = vector.shape_cast %78 : vector<1x8x32xbf16> to vector<8x32xbf16>
    %80 = vector.shape_cast %77 : vector<8x32xbf16> to vector<1x8x32xbf16>
    tpu.vector_store %arg3[%c0_20, %c0_21, %c0_22], %80 {strides = array<i32>} : memref<1x8x32xbf16, #tpu.memory_space<vmem>>, vector<1x8x32xbf16>,
    return
  }
  func.func @transform_0(%arg0: i32) -> (i32, i32, i32) {
    %c0_i32 = arith.constant 0 : i32
    %c0_i32_0 = arith.constant 0 : i32
    %c0_i32_1 = arith.constant 0 : i32
    return %arg0, %c0_i32, %c0_i32_0 : i32, i32, i32
  }
  func.func @transform_1(%arg0: i32) -> (i32, i32, i32) {
    %c0_i32 = arith.constant 0 : i32
    %c0_i32_0 = arith.constant 0 : i32
    %c0_i32_1 = arith.constant 0 : i32
    return %arg0, %c0_i32, %c0_i32_0 : i32, i32, i32
  }
  func.func @transform_2(%arg0: i32) -> (i32, i32, i32) {
    %c0_i32 = arith.constant 0 : i32
    %c0_i32_0 = arith.constant 0 : i32
    %c0_i32_1 = arith.constant 0 : i32
    return %arg0, %c0_i32, %c0_i32_0 : i32, i32, i32
  }
}

module attributes {stable_mosaic.version = 11 : i64} {
  func.func @post_kernel(%arg0: i32, %arg1: i32, %arg2: memref<16x32xf32, #tpu.memory_space<vmem>>, %arg3: memref<16x32xbf16, #tpu.memory_space<vmem>>, %arg4: memref<32x32xbf16, #tpu.memory_space<vmem>>, %arg5: memref<1x32xf32, #tpu.memory_space<vmem>>, %arg6: memref<1x32xf32, #tpu.memory_space<vmem>>, %arg7: memref<1x32xf32, #tpu.memory_space<vmem>>, %arg8: memref<32x128xbf16, #tpu.memory_space<vmem>>, %arg9: memref<1x128xf32, #tpu.memory_space<vmem>>, %arg10: memref<128x32xbf16, #tpu.memory_space<vmem>>, %arg11: memref<1x32xf32, #tpu.memory_space<vmem>>, %arg12: memref<1x32xf32, #tpu.memory_space<vmem>>, %arg13: memref<1x32xf32, #tpu.memory_space<vmem>>, %arg14: memref<16x32xf32, #tpu.memory_space<vmem>>, %arg15: memref<16x32xf32, #tpu.memory_space<vmem>>, %arg16: memref<16x32xf32, #tpu.memory_space<vmem>>) attributes {dimension_semantics = [#tpu.dimension_semantics<parallel>, #tpu.dimension_semantics<arbitrary>], iteration_bounds = array<i64: 1, 1>, scalar_prefetch = 0 : i64, scratch_operands = 2 : i64, tpu.core_type = #tpu.core_type<tc>, window_params = [{transform_indices = @transform_0, window_bounds = array<i64: 16, 32>}, {transform_indices = @transform_1, window_bounds = array<i64: 16, 32>}, {pipeline_mode = #tpu.pipeline_mode<synchronous>, transform_indices = @transform_2, window_bounds = array<i64: 32, 32>}, {pipeline_mode = #tpu.pipeline_mode<synchronous>, transform_indices = @transform_3, window_bounds = array<i64: 1, 32>}, {pipeline_mode = #tpu.pipeline_mode<synchronous>, transform_indices = @transform_4, window_bounds = array<i64: 1, 32>}, {pipeline_mode = #tpu.pipeline_mode<synchronous>, transform_indices = @transform_5, window_bounds = array<i64: 1, 32>}, {transform_indices = @transform_6, window_bounds = array<i64: 32, 128>}, {transform_indices = @transform_7, window_bounds = array<i64: 1, 128>}, {transform_indices = @transform_8, window_bounds = array<i64: 128, 32>}, {pipeline_mode = #tpu.pipeline_mode<synchronous>, transform_indices = @transform_9, window_bounds = array<i64: 1, 32>}, {pipeline_mode = #tpu.pipeline_mode<synchronous>, transform_indices = @transform_10, window_bounds = array<i64: 1, 32>}, {pipeline_mode = #tpu.pipeline_mode<synchronous>, transform_indices = @transform_11, window_bounds = array<i64: 1, 32>}, {transform_indices = @transform_12, window_bounds = array<i64: 16, 32>}]} {
    %c0_i32 = arith.constant 0 : i32
    %0 = arith.cmpi eq, %arg1, %c0_i32 : i32
    %1 = arith.extui %0 : i1 to i32
    %c0_i32_0 = arith.constant 0 : i32
    %2 = arith.cmpi ne, %1, %c0_i32_0 : i32
    scf.if %2 {
      %c0_16 = arith.constant 0 : index
      %c0_17 = arith.constant 0 : index
      %21 = vector.load %arg3[%c0_16, %c0_17] : memref<16x32xbf16, #tpu.memory_space<vmem>>, vector<16x32xbf16>
      %c0_18 = arith.constant 0 : index
      %c0_19 = arith.constant 0 : index
      %22 = vector.load %arg4[%c0_18, %c0_19] : memref<32x32xbf16, #tpu.memory_space<vmem>>, vector<32x32xbf16>
      %cst_20 = arith.constant dense<0.000000e+00> : vector<16x32xf32>
      %23 = tpu.matmul %21, %22, %cst_20 {dimension_numbers = #tpu.dot_dimension_numbers<[1], [0], [0], [1], [0, 0, 1, 1], [], []>} : vector<16x32xbf16>, vector<32x32xbf16>, vector<16x32xf32> -> vector<16x32xf32>
      %c0_21 = arith.constant 0 : index
      %c0_22 = arith.constant 0 : index
      %24 = vector.load %arg5[%c0_21, %c0_22] : memref<1x32xf32, #tpu.memory_space<vmem>>, vector<1x32xf32>
      %25 = vector.broadcast %24 : vector<1x32xf32> to vector<16x32xf32>
      %26 = arith.addf %23, %25 : vector<16x32xf32>
      %c0_23 = arith.constant 0 : index
      %c0_24 = arith.constant 0 : index
      %27 = vector.load %arg2[%c0_23, %c0_24] : memref<16x32xf32, #tpu.memory_space<vmem>>, vector<16x32xf32>
      %28 = arith.addf %27, %26 : vector<16x32xf32>
      %cst_25 = arith.constant dense<0.000000e+00> : vector<16xf32>
      %29 = vector.multi_reduction <add>, %28, %cst_25 [1] : vector<16x32xf32> to vector<16xf32>
      %30 = vector.shape_cast %29 : vector<16xf32> to vector<16x1xf32>
      %cst_26 = arith.constant 3.200000e+01 : f32
      %31 = vector.broadcast %cst_26 : f32 to vector<16x1xf32>
      %32 = arith.divf %30, %31 : vector<16x1xf32>
      %33 = vector.broadcast %32 : vector<16x1xf32> to vector<16x32xf32>
      %34 = arith.subf %28, %33 : vector<16x32xf32>
      %35 = arith.mulf %34, %34 : vector<16x32xf32>
      %cst_27 = arith.constant dense<0.000000e+00> : vector<16xf32>
      %36 = vector.multi_reduction <add>, %35, %cst_27 [1] : vector<16x32xf32> to vector<16xf32>
      %37 = vector.shape_cast %36 : vector<16xf32> to vector<16x1xf32>
      %cst_28 = arith.constant 3.200000e+01 : f32
      %38 = vector.broadcast %cst_28 : f32 to vector<16x1xf32>
      %39 = arith.divf %37, %38 : vector<16x1xf32>
      %40 = vector.broadcast %32 : vector<16x1xf32> to vector<16x32xf32>
      %41 = arith.subf %28, %40 : vector<16x32xf32>
      %cst_29 = arith.constant 9.99999974E-6 : f32
      %42 = vector.broadcast %cst_29 : f32 to vector<16x1xf32>
      %43 = arith.addf %39, %42 : vector<16x1xf32>
      %44 = math.rsqrt %43 : vector<16x1xf32>
      %45 = vector.broadcast %44 : vector<16x1xf32> to vector<16x32xf32>
      %46 = arith.mulf %41, %45 : vector<16x32xf32>
      %c0_30 = arith.constant 0 : index
      %c0_31 = arith.constant 0 : index
      %47 = vector.load %arg6[%c0_30, %c0_31] : memref<1x32xf32, #tpu.memory_space<vmem>>, vector<1x32xf32>
      %48 = vector.broadcast %47 : vector<1x32xf32> to vector<16x32xf32>
      %49 = arith.mulf %46, %48 : vector<16x32xf32>
      %c0_32 = arith.constant 0 : index
      %c0_33 = arith.constant 0 : index
      %50 = vector.load %arg7[%c0_32, %c0_33] : memref<1x32xf32, #tpu.memory_space<vmem>>, vector<1x32xf32>
      %51 = vector.broadcast %50 : vector<1x32xf32> to vector<16x32xf32>
      %52 = arith.addf %49, %51 : vector<16x32xf32>
      %c0_34 = arith.constant 0 : index
      %c0_35 = arith.constant 0 : index
      %53 = vector.load %arg15[%c0_34, %c0_35] : memref<16x32xf32, #tpu.memory_space<vmem>>, vector<16x32xf32>
      tpu.vector_store %arg15[%c0_34, %c0_35], %52 {strides = array<i32>} : memref<16x32xf32, #tpu.memory_space<vmem>>, vector<16x32xf32>,
      %cst_36 = arith.constant 0.000000e+00 : f32
      %54 = vector.broadcast %cst_36 : f32 to vector<16x32xf32>
      %c0_37 = arith.constant 0 : index
      %c0_38 = arith.constant 0 : index
      %55 = vector.load %arg16[%c0_37, %c0_38] : memref<16x32xf32, #tpu.memory_space<vmem>>, vector<16x32xf32>
      tpu.vector_store %arg16[%c0_37, %c0_38], %54 {strides = array<i32>} : memref<16x32xf32, #tpu.memory_space<vmem>>, vector<16x32xf32>,
    } else {
    }
    %c0 = arith.constant 0 : index
    %c0_1 = arith.constant 0 : index
    %3 = vector.load %arg15[%c0, %c0_1] : memref<16x32xf32, #tpu.memory_space<vmem>>, vector<16x32xf32>
    %4 = arith.truncf %3 : vector<16x32xf32> to vector<16x32xbf16>
    %c0_2 = arith.constant 0 : index
    %c0_3 = arith.constant 0 : index
    %5 = vector.load %arg8[%c0_2, %c0_3] : memref<32x128xbf16, #tpu.memory_space<vmem>>, vector<32x128xbf16>
    %cst = arith.constant dense<0.000000e+00> : vector<16x128xf32>
    %6 = tpu.matmul %4, %5, %cst {dimension_numbers = #tpu.dot_dimension_numbers<[1], [0], [0], [1], [0, 0, 1, 1], [], []>} : vector<16x32xbf16>, vector<32x128xbf16>, vector<16x128xf32> -> vector<16x128xf32>
    %c0_4 = arith.constant 0 : index
    %c0_5 = arith.constant 0 : index
    %7 = vector.load %arg9[%c0_4, %c0_5] : memref<1x128xf32, #tpu.memory_space<vmem>>, vector<1x128xf32>
    %8 = vector.broadcast %7 : vector<1x128xf32> to vector<16x128xf32>
    %9 = arith.addf %6, %8 : vector<16x128xf32>
    %cst_6 = arith.constant 0.000000e+00 : f32
    %10 = vector.broadcast %cst_6 : f32 to vector<16x128xf32>
    %11 = arith.maximumf %9, %10 : vector<16x128xf32>
    %c0_7 = arith.constant 0 : index
    %c0_8 = arith.constant 0 : index
    %12 = vector.load %arg16[%c0_7, %c0_8] : memref<16x32xf32, #tpu.memory_space<vmem>>, vector<16x32xf32>
    %13 = arith.truncf %11 : vector<16x128xf32> to vector<16x128xbf16>
    %c0_9 = arith.constant 0 : index
    %c0_10 = arith.constant 0 : index
    %14 = vector.load %arg10[%c0_9, %c0_10] : memref<128x32xbf16, #tpu.memory_space<vmem>>, vector<128x32xbf16>
    %cst_11 = arith.constant dense<0.000000e+00> : vector<16x32xf32>
    %15 = tpu.matmul %13, %14, %cst_11 {dimension_numbers = #tpu.dot_dimension_numbers<[1], [0], [0], [1], [0, 0, 1, 1], [], []>} : vector<16x128xbf16>, vector<128x32xbf16>, vector<16x32xf32> -> vector<16x32xf32>
    %16 = arith.addf %12, %15 : vector<16x32xf32>
    %c0_12 = arith.constant 0 : index
    %c0_13 = arith.constant 0 : index
    %17 = vector.load %arg16[%c0_12, %c0_13] : memref<16x32xf32, #tpu.memory_space<vmem>>, vector<16x32xf32>
    tpu.vector_store %arg16[%c0_12, %c0_13], %16 {strides = array<i32>} : memref<16x32xf32, #tpu.memory_space<vmem>>, vector<16x32xf32>,
    %c0_i32_14 = arith.constant 0 : i32
    %18 = arith.cmpi eq, %arg1, %c0_i32_14 : i32
    %19 = arith.extui %18 : i1 to i32
    %c0_i32_15 = arith.constant 0 : i32
    %20 = arith.cmpi ne, %19, %c0_i32_15 : i32
    scf.if %20 {
      %c0_16 = arith.constant 0 : index
      %c0_17 = arith.constant 0 : index
      %21 = vector.load %arg15[%c0_16, %c0_17] : memref<16x32xf32, #tpu.memory_space<vmem>>, vector<16x32xf32>
      %c0_18 = arith.constant 0 : index
      %c0_19 = arith.constant 0 : index
      %22 = vector.load %arg16[%c0_18, %c0_19] : memref<16x32xf32, #tpu.memory_space<vmem>>, vector<16x32xf32>
      %23 = arith.addf %21, %22 : vector<16x32xf32>
      %c0_20 = arith.constant 0 : index
      %c0_21 = arith.constant 0 : index
      %24 = vector.load %arg11[%c0_20, %c0_21] : memref<1x32xf32, #tpu.memory_space<vmem>>, vector<1x32xf32>
      %25 = vector.broadcast %24 : vector<1x32xf32> to vector<16x32xf32>
      %26 = arith.addf %23, %25 : vector<16x32xf32>
      %cst_22 = arith.constant dense<0.000000e+00> : vector<16xf32>
      %27 = vector.multi_reduction <add>, %26, %cst_22 [1] : vector<16x32xf32> to vector<16xf32>
      %28 = vector.shape_cast %27 : vector<16xf32> to vector<16x1xf32>
      %cst_23 = arith.constant 3.200000e+01 : f32
      %29 = vector.broadcast %cst_23 : f32 to vector<16x1xf32>
      %30 = arith.divf %28, %29 : vector<16x1xf32>
      %31 = vector.broadcast %30 : vector<16x1xf32> to vector<16x32xf32>
      %32 = arith.subf %26, %31 : vector<16x32xf32>
      %33 = arith.mulf %32, %32 : vector<16x32xf32>
      %cst_24 = arith.constant dense<0.000000e+00> : vector<16xf32>
      %34 = vector.multi_reduction <add>, %33, %cst_24 [1] : vector<16x32xf32> to vector<16xf32>
      %35 = vector.shape_cast %34 : vector<16xf32> to vector<16x1xf32>
      %cst_25 = arith.constant 3.200000e+01 : f32
      %36 = vector.broadcast %cst_25 : f32 to vector<16x1xf32>
      %37 = arith.divf %35, %36 : vector<16x1xf32>
      %38 = vector.broadcast %30 : vector<16x1xf32> to vector<16x32xf32>
      %39 = arith.subf %26, %38 : vector<16x32xf32>
      %cst_26 = arith.constant 9.99999974E-6 : f32
      %40 = vector.broadcast %cst_26 : f32 to vector<16x1xf32>
      %41 = arith.addf %37, %40 : vector<16x1xf32>
      %42 = math.rsqrt %41 : vector<16x1xf32>
      %43 = vector.broadcast %42 : vector<16x1xf32> to vector<16x32xf32>
      %44 = arith.mulf %39, %43 : vector<16x32xf32>
      %c0_27 = arith.constant 0 : index
      %c0_28 = arith.constant 0 : index
      %45 = vector.load %arg12[%c0_27, %c0_28] : memref<1x32xf32, #tpu.memory_space<vmem>>, vector<1x32xf32>
      %46 = vector.broadcast %45 : vector<1x32xf32> to vector<16x32xf32>
      %47 = arith.mulf %44, %46 : vector<16x32xf32>
      %c0_29 = arith.constant 0 : index
      %c0_30 = arith.constant 0 : index
      %48 = vector.load %arg13[%c0_29, %c0_30] : memref<1x32xf32, #tpu.memory_space<vmem>>, vector<1x32xf32>
      %49 = vector.broadcast %48 : vector<1x32xf32> to vector<16x32xf32>
      %50 = arith.addf %47, %49 : vector<16x32xf32>
      %c0_31 = arith.constant 0 : index
      %c0_32 = arith.constant 0 : index
      %51 = vector.load %arg14[%c0_31, %c0_32] : memref<16x32xf32, #tpu.memory_space<vmem>>, vector<16x32xf32>
      tpu.vector_store %arg14[%c0_31, %c0_32], %50 {strides = array<i32>} : memref<16x32xf32, #tpu.memory_space<vmem>>, vector<16x32xf32>,
    } else {
    }
    return
  }
  func.func @transform_0(%arg0: i32, %arg1: i32) -> (i32, i32) {
    %c0_i32 = arith.constant 0 : i32
    %c0_i32_0 = arith.constant 0 : i32
    return %arg0, %c0_i32 : i32, i32
  }
  func.func @transform_1(%arg0: i32, %arg1: i32) -> (i32, i32) {
    %c0_i32 = arith.constant 0 : i32
    %c0_i32_0 = arith.constant 0 : i32
    return %arg0, %c0_i32 : i32, i32
  }
  func.func @transform_2(%arg0: i32, %arg1: i32) -> (i32, i32) {
    %c0_i32 = arith.constant 0 : i32
    %c0_i32_0 = arith.constant 0 : i32
    %c0_i32_1 = arith.constant 0 : i32
    return %c0_i32, %c0_i32_0 : i32, i32
  }
  func.func @transform_3(%arg0: i32, %arg1: i32) -> (i32, i32) {
    %c0_i32 = arith.constant 0 : i32
    %c0_i32_0 = arith.constant 0 : i32
    %c0_i32_1 = arith.constant 0 : i32
    return %c0_i32, %c0_i32_0 : i32, i32
  }
  func.func @transform_4(%arg0: i32, %arg1: i32) -> (i32, i32) {
    %c0_i32 = arith.constant 0 : i32
    %c0_i32_0 = arith.constant 0 : i32
    %c0_i32_1 = arith.constant 0 : i32
    return %c0_i32, %c0_i32_0 : i32, i32
  }
  func.func @transform_5(%arg0: i32, %arg1: i32) -> (i32, i32) {
    %c0_i32 = arith.constant 0 : i32
    %c0_i32_0 = arith.constant 0 : i32
    %c0_i32_1 = arith.constant 0 : i32
    return %c0_i32, %c0_i32_0 : i32, i32
  }
  func.func @transform_6(%arg0: i32, %arg1: i32) -> (i32, i32) {
    %c0_i32 = arith.constant 0 : i32
    %c0_i32_0 = arith.constant 0 : i32
    return %c0_i32, %arg1 : i32, i32
  }
  func.func @transform_7(%arg0: i32, %arg1: i32) -> (i32, i32) {
    %c0_i32 = arith.constant 0 : i32
    %c0_i32_0 = arith.constant 0 : i32
    return %c0_i32, %arg1 : i32, i32
  }
  func.func @transform_8(%arg0: i32, %arg1: i32) -> (i32, i32) {
    %c0_i32 = arith.constant 0 : i32
    %c0_i32_0 = arith.constant 0 : i32
    return %arg1, %c0_i32 : i32, i32
  }
  func.func @transform_9(%arg0: i32, %arg1: i32) -> (i32, i32) {
    %c0_i32 = arith.constant 0 : i32
    %c0_i32_0 = arith.constant 0 : i32
    %c0_i32_1 = arith.constant 0 : i32
    return %c0_i32, %c0_i32_0 : i32, i32
  }
  func.func @transform_10(%arg0: i32, %arg1: i32) -> (i32, i32) {
    %c0_i32 = arith.constant 0 : i32
    %c0_i32_0 = arith.constant 0 : i32
    %c0_i32_1 = arith.constant 0 : i32
    return %c0_i32, %c0_i32_0 : i32, i32
  }
  func.func @transform_11(%arg0: i32, %arg1: i32) -> (i32, i32) {
    %c0_i32 = arith.constant 0 : i32
    %c0_i32_0 = arith.constant 0 : i32
    %c0_i32_1 = arith.constant 0 : i32
    return %c0_i32, %c0_i32_0 : i32, i32
  }
  func.func @transform_12(%arg0: i32, %arg1: i32) -> (i32, i32) {
    %c0_i32 = arith.constant 0 : i32
    %c0_i32_0 = arith.constant 0 : i32
    return %arg0, %c0_i32 : i32, i32
  }
}

module attributes {stable_mosaic.version = 11 : i64} {
  func.func @post_kernel(%arg0: i32, %arg1: i32, %arg2: memref<16x32xf32, #tpu.memory_space<vmem>>, %arg3: memref<16x32xbf16, #tpu.memory_space<vmem>>, %arg4: memref<32x32xbf16, #tpu.memory_space<vmem>>, %arg5: memref<1x32xf32, #tpu.memory_space<vmem>>, %arg6: memref<1x32xf32, #tpu.memory_space<vmem>>, %arg7: memref<1x32xf32, #tpu.memory_space<vmem>>, %arg8: memref<32x128xbf16, #tpu.memory_space<vmem>>, %arg9: memref<1x128xf32, #tpu.memory_space<vmem>>, %arg10: memref<128x32xbf16, #tpu.memory_space<vmem>>, %arg11: memref<1x32xf32, #tpu.memory_space<vmem>>, %arg12: memref<1x32xf32, #tpu.memory_space<vmem>>, %arg13: memref<1x32xf32, #tpu.memory_space<vmem>>, %arg14: memref<16x32xf32, #tpu.memory_space<vmem>>, %arg15: memref<16x32xf32, #tpu.memory_space<vmem>>, %arg16: memref<16x32xf32, #tpu.memory_space<vmem>>) attributes {dimension_semantics = [#tpu.dimension_semantics<parallel>, #tpu.dimension_semantics<arbitrary>], iteration_bounds = array<i64: 1, 1>, scalar_prefetch = 0 : i64, scratch_operands = 2 : i64, tpu.core_type = #tpu.core_type<tc>, window_params = [{transform_indices = @transform_0, window_bounds = array<i64: 16, 32>}, {transform_indices = @transform_1, window_bounds = array<i64: 16, 32>}, {pipeline_mode = #tpu.pipeline_mode<synchronous>, transform_indices = @transform_2, window_bounds = array<i64: 32, 32>}, {pipeline_mode = #tpu.pipeline_mode<synchronous>, transform_indices = @transform_3, window_bounds = array<i64: 1, 32>}, {pipeline_mode = #tpu.pipeline_mode<synchronous>, transform_indices = @transform_4, window_bounds = array<i64: 1, 32>}, {pipeline_mode = #tpu.pipeline_mode<synchronous>, transform_indices = @transform_5, window_bounds = array<i64: 1, 32>}, {transform_indices = @transform_6, window_bounds = array<i64: 32, 128>}, {transform_indices = @transform_7, window_bounds = array<i64: 1, 128>}, {transform_indices = @transform_8, window_bounds = array<i64: 128, 32>}, {pipeline_mode = #tpu.pipeline_mode<synchronous>, transform_indices = @transform_9, window_bounds = array<i64: 1, 32>}, {pipeline_mode = #tpu.pipeline_mode<synchronous>, transform_indices = @transform_10, window_bounds = array<i64: 1, 32>}, {pipeline_mode = #tpu.pipeline_mode<synchronous>, transform_indices = @transform_11, window_bounds = array<i64: 1, 32>}, {transform_indices = @transform_12, window_bounds = array<i64: 16, 32>}]} {
    %c0_i32 = arith.constant 0 : i32
    %0 = arith.cmpi eq, %arg1, %c0_i32 : i32
    %1 = arith.extui %0 : i1 to i32
    %c0_i32_0 = arith.constant 0 : i32
    %2 = arith.cmpi ne, %1, %c0_i32_0 : i32
    scf.if %2 {
      %c0_16 = arith.constant 0 : index
      %c0_17 = arith.constant 0 : index
      %21 = vector.load %arg3[%c0_16, %c0_17] : memref<16x32xbf16, #tpu.memory_space<vmem>>, vector<16x32xbf16>
      %c0_18 = arith.constant 0 : index
      %c0_19 = arith.constant 0 : index
      %22 = vector.load %arg4[%c0_18, %c0_19] : memref<32x32xbf16, #tpu.memory_space<vmem>>, vector<32x32xbf16>
      %cst_20 = arith.constant dense<0.000000e+00> : vector<16x32xf32>
      %23 = tpu.matmul %21, %22, %cst_20 {dimension_numbers = #tpu.dot_dimension_numbers<[1], [0], [0], [1], [0, 0, 1, 1], [], []>} : vector<16x32xbf16>, vector<32x32xbf16>, vector<16x32xf32> -> vector<16x32xf32>
      %c0_21 = arith.constant 0 : index
      %c0_22 = arith.constant 0 : index
      %24 = vector.load %arg5[%c0_21, %c0_22] : memref<1x32xf32, #tpu.memory_space<vmem>>, vector<1x32xf32>
      %25 = vector.broadcast %24 : vector<1x32xf32> to vector<16x32xf32>
      %26 = arith.addf %23, %25 : vector<16x32xf32>
      %c0_23 = arith.constant 0 : index
      %c0_24 = arith.constant 0 : index
      %27 = vector.load %arg2[%c0_23, %c0_24] : memref<16x32xf32, #tpu.memory_space<vmem>>, vector<16x32xf32>
      %28 = arith.addf %27, %26 : vector<16x32xf32>
      %cst_25 = arith.constant dense<0.000000e+00> : vector<16xf32>
      %29 = vector.multi_reduction <add>, %28, %cst_25 [1] : vector<16x32xf32> to vector<16xf32>
      %30 = vector.shape_cast %29 : vector<16xf32> to vector<16x1xf32>
      %cst_26 = arith.constant 3.200000e+01 : f32
      %31 = vector.broadcast %cst_26 : f32 to vector<16x1xf32>
      %32 = arith.divf %30, %31 : vector<16x1xf32>
      %33 = vector.broadcast %32 : vector<16x1xf32> to vector<16x32xf32>
      %34 = arith.subf %28, %33 : vector<16x32xf32>
      %35 = arith.mulf %34, %34 : vector<16x32xf32>
      %cst_27 = arith.constant dense<0.000000e+00> : vector<16xf32>
      %36 = vector.multi_reduction <add>, %35, %cst_27 [1] : vector<16x32xf32> to vector<16xf32>
      %37 = vector.shape_cast %36 : vector<16xf32> to vector<16x1xf32>
      %cst_28 = arith.constant 3.200000e+01 : f32
      %38 = vector.broadcast %cst_28 : f32 to vector<16x1xf32>
      %39 = arith.divf %37, %38 : vector<16x1xf32>
      %40 = vector.broadcast %32 : vector<16x1xf32> to vector<16x32xf32>
      %41 = arith.subf %28, %40 : vector<16x32xf32>
      %cst_29 = arith.constant 9.99999974E-6 : f32
      %42 = vector.broadcast %cst_29 : f32 to vector<16x1xf32>
      %43 = arith.addf %39, %42 : vector<16x1xf32>
      %44 = math.rsqrt %43 : vector<16x1xf32>
      %45 = vector.broadcast %44 : vector<16x1xf32> to vector<16x32xf32>
      %46 = arith.mulf %41, %45 : vector<16x32xf32>
      %c0_30 = arith.constant 0 : index
      %c0_31 = arith.constant 0 : index
      %47 = vector.load %arg6[%c0_30, %c0_31] : memref<1x32xf32, #tpu.memory_space<vmem>>, vector<1x32xf32>
      %48 = vector.broadcast %47 : vector<1x32xf32> to vector<16x32xf32>
      %49 = arith.mulf %46, %48 : vector<16x32xf32>
      %c0_32 = arith.constant 0 : index
      %c0_33 = arith.constant 0 : index
      %50 = vector.load %arg7[%c0_32, %c0_33] : memref<1x32xf32, #tpu.memory_space<vmem>>, vector<1x32xf32>
      %51 = vector.broadcast %50 : vector<1x32xf32> to vector<16x32xf32>
      %52 = arith.addf %49, %51 : vector<16x32xf32>
      %c0_34 = arith.constant 0 : index
      %c0_35 = arith.constant 0 : index
      %53 = vector.load %arg15[%c0_34, %c0_35] : memref<16x32xf32, #tpu.memory_space<vmem>>, vector<16x32xf32>
      tpu.vector_store %arg15[%c0_34, %c0_35], %52 {strides = array<i32>} : memref<16x32xf32, #tpu.memory_space<vmem>>, vector<16x32xf32>,
      %cst_36 = arith.constant 0.000000e+00 : f32
      %54 = vector.broadcast %cst_36 : f32 to vector<16x32xf32>
      %c0_37 = arith.constant 0 : index
      %c0_38 = arith.constant 0 : index
      %55 = vector.load %arg16[%c0_37, %c0_38] : memref<16x32xf32, #tpu.memory_space<vmem>>, vector<16x32xf32>
      tpu.vector_store %arg16[%c0_37, %c0_38], %54 {strides = array<i32>} : memref<16x32xf32, #tpu.memory_space<vmem>>, vector<16x32xf32>,
    } else {
    }
    %c0 = arith.constant 0 : index
    %c0_1 = arith.constant 0 : index
    %3 = vector.load %arg15[%c0, %c0_1] : memref<16x32xf32, #tpu.memory_space<vmem>>, vector<16x32xf32>
    %4 = arith.truncf %3 : vector<16x32xf32> to vector<16x32xbf16>
    %c0_2 = arith.constant 0 : index
    %c0_3 = arith.constant 0 : index
    %5 = vector.load %arg8[%c0_2, %c0_3] : memref<32x128xbf16, #tpu.memory_space<vmem>>, vector<32x128xbf16>
    %cst = arith.constant dense<0.000000e+00> : vector<16x128xf32>
    %6 = tpu.matmul %4, %5, %cst {dimension_numbers = #tpu.dot_dimension_numbers<[1], [0], [0], [1], [0, 0, 1, 1], [], []>} : vector<16x32xbf16>, vector<32x128xbf16>, vector<16x128xf32> -> vector<16x128xf32>
    %c0_4 = arith.constant 0 : index
    %c0_5 = arith.constant 0 : index
    %7 = vector.load %arg9[%c0_4, %c0_5] : memref<1x128xf32, #tpu.memory_space<vmem>>, vector<1x128xf32>
    %8 = vector.broadcast %7 : vector<1x128xf32> to vector<16x128xf32>
    %9 = arith.addf %6, %8 : vector<16x128xf32>
    %cst_6 = arith.constant 0.000000e+00 : f32
    %10 = vector.broadcast %cst_6 : f32 to vector<16x128xf32>
    %11 = arith.maximumf %9, %10 : vector<16x128xf32>
    %c0_7 = arith.constant 0 : index
    %c0_8 = arith.constant 0 : index
    %12 = vector.load %arg16[%c0_7, %c0_8] : memref<16x32xf32, #tpu.memory_space<vmem>>, vector<16x32xf32>
    %13 = arith.truncf %11 : vector<16x128xf32> to vector<16x128xbf16>
    %c0_9 = arith.constant 0 : index
    %c0_10 = arith.constant 0 : index
    %14 = vector.load %arg10[%c0_9, %c0_10] : memref<128x32xbf16, #tpu.memory_space<vmem>>, vector<128x32xbf16>
    %cst_11 = arith.constant dense<0.000000e+00> : vector<16x32xf32>
    %15 = tpu.matmul %13, %14, %cst_11 {dimension_numbers = #tpu.dot_dimension_numbers<[1], [0], [0], [1], [0, 0, 1, 1], [], []>} : vector<16x128xbf16>, vector<128x32xbf16>, vector<16x32xf32> -> vector<16x32xf32>
    %16 = arith.addf %12, %15 : vector<16x32xf32>
    %c0_12 = arith.constant 0 : index
    %c0_13 = arith.constant 0 : index
    %17 = vector.load %arg16[%c0_12, %c0_13] : memref<16x32xf32, #tpu.memory_space<vmem>>, vector<16x32xf32>
    tpu.vector_store %arg16[%c0_12, %c0_13], %16 {strides = array<i32>} : memref<16x32xf32, #tpu.memory_space<vmem>>, vector<16x32xf32>,
    %c0_i32_14 = arith.constant 0 : i32
    %18 = arith.cmpi eq, %arg1, %c0_i32_14 : i32
    %19 = arith.extui %18 : i1 to i32
    %c0_i32_15 = arith.constant 0 : i32
    %20 = arith.cmpi ne, %19, %c0_i32_15 : i32
    scf.if %20 {
      %c0_16 = arith.constant 0 : index
      %c0_17 = arith.constant 0 : index
      %21 = vector.load %arg15[%c0_16, %c0_17] : memref<16x32xf32, #tpu.memory_space<vmem>>, vector<16x32xf32>
      %c0_18 = arith.constant 0 : index
      %c0_19 = arith.constant 0 : index
      %22 = vector.load %arg16[%c0_18, %c0_19] : memref<16x32xf32, #tpu.memory_space<vmem>>, vector<16x32xf32>
      %23 = arith.addf %21, %22 : vector<16x32xf32>
      %c0_20 = arith.constant 0 : index
      %c0_21 = arith.constant 0 : index
      %24 = vector.load %arg11[%c0_20, %c0_21] : memref<1x32xf32, #tpu.memory_space<vmem>>, vector<1x32xf32>
      %25 = vector.broadcast %24 : vector<1x32xf32> to vector<16x32xf32>
      %26 = arith.addf %23, %25 : vector<16x32xf32>
      %cst_22 = arith.constant dense<0.000000e+00> : vector<16xf32>
      %27 = vector.multi_reduction <add>, %26, %cst_22 [1] : vector<16x32xf32> to vector<16xf32>
      %28 = vector.shape_cast %27 : vector<16xf32> to vector<16x1xf32>
      %cst_23 = arith.constant 3.200000e+01 : f32
      %29 = vector.broadcast %cst_23 : f32 to vector<16x1xf32>
      %30 = arith.divf %28, %29 : vector<16x1xf32>
      %31 = vector.broadcast %30 : vector<16x1xf32> to vector<16x32xf32>
      %32 = arith.subf %26, %31 : vector<16x32xf32>
      %33 = arith.mulf %32, %32 : vector<16x32xf32>
      %cst_24 = arith.constant dense<0.000000e+00> : vector<16xf32>
      %34 = vector.multi_reduction <add>, %33, %cst_24 [1] : vector<16x32xf32> to vector<16xf32>
      %35 = vector.shape_cast %34 : vector<16xf32> to vector<16x1xf32>
      %cst_25 = arith.constant 3.200000e+01 : f32
      %36 = vector.broadcast %cst_25 : f32 to vector<16x1xf32>
      %37 = arith.divf %35, %36 : vector<16x1xf32>
      %38 = vector.broadcast %30 : vector<16x1xf32> to vector<16x32xf32>
      %39 = arith.subf %26, %38 : vector<16x32xf32>
      %cst_26 = arith.constant 9.99999974E-6 : f32
      %40 = vector.broadcast %cst_26 : f32 to vector<16x1xf32>
      %41 = arith.addf %37, %40 : vector<16x1xf32>
      %42 = math.rsqrt %41 : vector<16x1xf32>
      %43 = vector.broadcast %42 : vector<16x1xf32> to vector<16x32xf32>
      %44 = arith.mulf %39, %43 : vector<16x32xf32>
      %c0_27 = arith.constant 0 : index
      %c0_28 = arith.constant 0 : index
      %45 = vector.load %arg12[%c0_27, %c0_28] : memref<1x32xf32, #tpu.memory_space<vmem>>, vector<1x32xf32>
      %46 = vector.broadcast %45 : vector<1x32xf32> to vector<16x32xf32>
      %47 = arith.mulf %44, %46 : vector<16x32xf32>
      %c0_29 = arith.constant 0 : index
      %c0_30 = arith.constant 0 : index
      %48 = vector.load %arg13[%c0_29, %c0_30] : memref<1x32xf32, #tpu.memory_space<vmem>>, vector<1x32xf32>
      %49 = vector.broadcast %48 : vector<1x32xf32> to vector<16x32xf32>
      %50 = arith.addf %47, %49 : vector<16x32xf32>
      %c0_31 = arith.constant 0 : index
      %c0_32 = arith.constant 0 : index
      %51 = vector.load %arg14[%c0_31, %c0_32] : memref<16x32xf32, #tpu.memory_space<vmem>>, vector<16x32xf32>
      tpu.vector_store %arg14[%c0_31, %c0_32], %50 {strides = array<i32>} : memref<16x32xf32, #tpu.memory_space<vmem>>, vector<16x32xf32>,
    } else {
    }
    return
  }
  func.func @transform_0(%arg0: i32, %arg1: i32) -> (i32, i32) {
    %c0_i32 = arith.constant 0 : i32
    %c0_i32_0 = arith.constant 0 : i32
    return %arg0, %c0_i32 : i32, i32
  }
  func.func @transform_1(%arg0: i32, %arg1: i32) -> (i32, i32) {
    %c0_i32 = arith.constant 0 : i32
    %c0_i32_0 = arith.constant 0 : i32
    return %arg0, %c0_i32 : i32, i32
  }
  func.func @transform_2(%arg0: i32, %arg1: i32) -> (i32, i32) {
    %c0_i32 = arith.constant 0 : i32
    %c0_i32_0 = arith.constant 0 : i32
    %c0_i32_1 = arith.constant 0 : i32
    return %c0_i32, %c0_i32_0 : i32, i32
  }
  func.func @transform_3(%arg0: i32, %arg1: i32) -> (i32, i32) {
    %c0_i32 = arith.constant 0 : i32
    %c0_i32_0 = arith.constant 0 : i32
    %c0_i32_1 = arith.constant 0 : i32
    return %c0_i32, %c0_i32_0 : i32, i32
  }
  func.func @transform_4(%arg0: i32, %arg1: i32) -> (i32, i32) {
    %c0_i32 = arith.constant 0 : i32
    %c0_i32_0 = arith.constant 0 : i32
    %c0_i32_1 = arith.constant 0 : i32
    return %c0_i32, %c0_i32_0 : i32, i32
  }
  func.func @transform_5(%arg0: i32, %arg1: i32) -> (i32, i32) {
    %c0_i32 = arith.constant 0 : i32
    %c0_i32_0 = arith.constant 0 : i32
    %c0_i32_1 = arith.constant 0 : i32
    return %c0_i32, %c0_i32_0 : i32, i32
  }
  func.func @transform_6(%arg0: i32, %arg1: i32) -> (i32, i32) {
    %c0_i32 = arith.constant 0 : i32
    %c0_i32_0 = arith.constant 0 : i32
    return %c0_i32, %arg1 : i32, i32
  }
  func.func @transform_7(%arg0: i32, %arg1: i32) -> (i32, i32) {
    %c0_i32 = arith.constant 0 : i32
    %c0_i32_0 = arith.constant 0 : i32
    return %c0_i32, %arg1 : i32, i32
  }
  func.func @transform_8(%arg0: i32, %arg1: i32) -> (i32, i32) {
    %c0_i32 = arith.constant 0 : i32
    %c0_i32_0 = arith.constant 0 : i32
    return %arg1, %c0_i32 : i32, i32
  }
  func.func @transform_9(%arg0: i32, %arg1: i32) -> (i32, i32) {
    %c0_i32 = arith.constant 0 : i32
    %c0_i32_0 = arith.constant 0 : i32
    %c0_i32_1 = arith.constant 0 : i32
    return %c0_i32, %c0_i32_0 : i32, i32
  }
  func.func @transform_10(%arg0: i32, %arg1: i32) -> (i32, i32) {
    %c0_i32 = arith.constant 0 : i32
    %c0_i32_0 = arith.constant 0 : i32
    %c0_i32_1 = arith.constant 0 : i32
    return %c0_i32, %c0_i32_0 : i32, i32
  }
  func.func @transform_11(%arg0: i32, %arg1: i32) -> (i32, i32) {
    %c0_i32 = arith.constant 0 : i32
    %c0_i32_0 = arith.constant 0 : i32
    %c0_i32_1 = arith.constant 0 : i32
    return %c0_i32, %c0_i32_0 : i32, i32
  }
  func.func @transform_12(%arg0: i32, %arg1: i32) -> (i32, i32) {
    %c0_i32 = arith.constant 0 : i32
    %c0_i32_0 = arith.constant 0 : i32
    return %arg0, %c0_i32 : i32, i32
  }
}

</mosaic_0001>

<bundles_post_ra>
// kernel: trans_layer_forward.6
= control target key start
LH: loop header
LB: loop body
LE: loop exit
PB: predicated region body
PF: predicated region fallthrough
CT: control target
= control target key end

     0   :  { %v130_v0 = vmov 0.0   ;;  %vm131_vm0 = vmmov 0   ;;  %vm45_vm1 = vcmask 261120   ;;  %vm98_vm2 = vcmask 781312   ;;  %s170_s1 = inlined_call_operand.vmem [shape: bf16[32,96], index: 1, kind: input, shape index: {}]   ;;  %s171_s0 = inlined_call_operand.vmem [shape: bf16[16,32], index: 0, kind: input, shape index: {}]   ;;  %s172_s2 = inlined_call_operand.vmem [shape: f32[1,96], index: 2, kind: input, shape index: {}]   ;;  %s173_s3 = inlined_call_operand.vmem [shape: bf16[16,96], index: 3, kind: output, shape index: {}]  }
   0x1   :  { %117 = vmatprep.subr.bf16.mxu0 %v130_v0  ;;  %v127_v1 = vld [vmem:[%s170_s1] sm:$0xff]   ;;  %121 = vmatprep.mubr.msk.bf16.mxu0 %vm131_vm0, %v130_v0  ;;  %v128_v2 = vld [vmem:[%s170_s1 + $0x8] sm:$0xff]  }
   0x2   :  { %118 = vmatpush3.bf16.msra.mxu0 %v127_v1  ;;  %v129_v3 = vld [vmem:[%s171_s0] sm:$0xff]  }
   0x3   :  { %119 = vmatprep.subr.bf16.mxu0 %v130_v0  ;;  %v105_v4 = vld [vmem:[%s172_s2] ss:$0 sm:$0xff] }
   0x6   :  { %120 = vmatpush3.bf16.msra.mxu0 %v128_v2 }
   0x9   :  { %122 = vmatmul.mubr.msk.bf16.vlgmr.msra.gmra.mrb[0].mxu0 %vm45_vm1, %v129_v3 }
  0xdc   :  { %v83_v5 = vpop.f32.mrb[0].mxu0 }
  0xdd   :  { %v84_v6 = vadd.f32 %v105_v4, %v83_v5  ;;  %v123_v7 = vpop.f32.mrb[1].mxu0 }
  0xde   :  { %v86_v8 = vpop.f32.mrb[2].mxu0 }
  0xdf   :  { %v112_v9 = vpack.c.bf16 %v84_v6, %v84_v6  ;;  %v87_v10 = vadd.f32 %v105_v4, %v86_v8  ;;  %v124_v11 = vpop.f32.mrb[3].mxu0 }
  0xe1   :  { %99 = vst.msk [vmem:[%s173_s3] sm:$0xf] %vm98_vm2, %v112_v9  ;;  %v113_v12 = vpack.c.bf16 %v87_v10, %v87_v10 }
  0xe3   :  { %100 = vst.msk [vmem:[%s173_s3 + $0x4] sm:$0xf] %vm98_vm2, %v113_v12 }

// kernel: trans_layer_forward.7
= control target key start
LH: loop header
LB: loop body
LE: loop exit
PB: predicated region body
PF: predicated region fallthrough
CT: control target
= control target key end

     0   :  { %s850_s9 = smov 0   ;;  %s949_s0 = inlined_call_operand.vmem [shape: bf16[2,8,96], index: 0, kind: input, shape index: {}]   ;;  %s950_s1 = inlined_call_operand.vmem [shape: f32[2,1,8], index: 1, kind: input, shape index: {}]   ;;  %s951_s2 = inlined_call_operand.vmem [shape: bf16[2,8,32], index: 2, kind: output, shape index: {}]  }
   0x1 LB: > { %s687_s10 = sadd.s32 4294967295, %s817_s9   ;;  %p691_p0 = scmp.ge.s32.totalorder %s817_s9, 1  ;;  %s817_s9 = sphi %s850_s9, %s12_s9  }
   0x2   : > { %p119_p1 = scmp.lt.s32.totalorder %s817_s9, 3 }
   0x4   : > { %p120_p2 = pnand %p691_p0, %p119_p1 }
   0x5   : > { %p142_p3 = scmp.lt.s32.totalorder (!%p120_p2), %s687_s10, 1  ;;  %v819_v0 = vmov (!%p120_p2), 0.0   ;;  %vm820_vm0 = vmmov (!%p120_p2), 0   ;;  %s821_s15 = smov (!%p120_p2), 96   ;;  %vm167_vm1 = vcmask (!%p120_p2), 64512   ;;  %vm231_vm2 = vcmask (!%p120_p2), 1043456  }
   0x6   : > { %123 = sbr.rel (%p120_p2) target bundleno = 1602 (0x642), region = 28  ;;  %722 = vmatprep.subr.bf16.mxu0 (!%p120_p2), %v819_v0  ;;  %724 = vmatprep.mubr.msk.bf16.mxu0 (!%p120_p2), %vm820_vm0, %v819_v0  ;;  %s822_s16 = smov (!%p120_p2), 64   ;;  %vm618_vm3 = vcmask (!%p120_p2), 130048   ;;  %vm620_vm4 = vcmask (!%p120_p2), 195584   ;;  %vm623_vm5 = vcmask (!%p120_p2), 257024  }
   0x7   : > { %728 = vmatprep.subr.bf16.mxu1 (!%p120_p2), %v819_v0  ;;  %730 = vmatprep.mubr.msk.bf16.mxu1 (!%p120_p2), %vm820_vm0, %v819_v0  ;;  %s823_s17 = smov (!%p120_p2), 88   ;;  %s824_s21 = smov (!%p120_p2), 72  }
   0x8   : > { %s825_s22 = smov (!%p120_p2), 120   ;;  %s826_s23 = smov (!%p120_p2), 80  }
   0x9   : > { %s827_s24 = smov (!%p120_p2), 112   ;;  %s828_s25 = smov (!%p120_p2), 104  }
   0xa   : > { %s829_s26 = smov (!%p120_p2), 56   ;;  %s830_s27 = smov (!%p120_p2), 48  }
   0xb   : > { %s831_s28 = smov (!%p120_p2), 40   ;;  %s832_s29 = smov (!%p120_p2), 8  }
   0xc   : > { %s833_s30 = smov (!%p120_p2), 16   ;;  %s834_s3 = smov (!%p120_p2), 24  }
   0xd   : > { %s953_s10 = smov (!%p142_p3, %s687_s10), 1 }
   0xe   : > { %s692_s11 = sshll.u32 %s953_s10, 2  ;;  %s148_s20 = scalar_lea.vmem %s950_s1, %s953_s10 }
   0xf   : > { %s145_s14 = scalar_lea.vmem %s949_s0, %s692_s11  ;;  %v886_v5 = vld [vmem:[%s148_s20] ss:$0 sm:$0xff]  ;;  %s152_s6 = scalar_lea.vmem %s951_s2, %s692_s11 }
  0x10   : > { %v154_v1 = vld [vmem:[%s145_s14] sm:$0xf] }
  0x11   : > { %v872_v2 = vcombine.low %v154_v1, %v154_v1 }
  0x13   : > { %165 = vrot.lane.b32.xlu0 %v872_v2, %s821_s15  ;;  %226 = vrot.lane.b32.xlu1 %v872_v2, %s822_s16 }
  0x17   : > { %277 = vrot.lane.b32.xlu1 %v872_v2, %s823_s17 }
  0x85   : > { %v166_v3 = vpop.permute.xlu0 %165  ;;  %v227_v12 = vpop.permute.xlu1 %226 }
  0x86   : > { %v172_v4 = vsel %vm167_vm1, %v166_v3, 0  ;;  %v233_v13 = vsel %vm231_vm2, %v227_v12, 0 }
  0x87   : > { %723 = vmatpush3.bf16.xpose.msra.mxu0 %v172_v4  ;;  %729 = vmatpush3.bf16.msra.mxu1 %v233_v13 }
  0x88   : > { %740 = vmatprep.subr.bf16.mxu0 %v819_v0  ;;  %734 = vmatprep.subr.bf16.mxu1 %v819_v0 }
  0x89   : > { %v278_v19 = vpop.permute.xlu1 %277 }
  0x8a   : > { %v283_v25 = vsel %vm167_vm1, %v278_v19, 0 }
  0x8e   : > { %725 = vmatmul.mubr.msk.bf16.vlgmr.msra.gmra.mrb[0].mxu0 %vm167_vm1, %v154_v1 }
  0x8f   : > { %742 = vmatprep.mubr.msk.bf16.mxu0 %vm820_vm0, %v819_v0 }
 0x161   : > { %v208_v6 = vpop.f32.mrb[0].mxu0 }
 0x162   : > { %v209_v7 = vadd.f32 %v886_v5, %v208_v6  ;;  %v726_v8 = vpop.f32.mrb[1].mxu0 }
 0x163   : > { %v211_v9 = vpop.f32.mrb[2].mxu0 }
 0x164   : > { %v727_v10 = vpop.f32.mrb[3].mxu0  ;;  %v214_v11 = vsel %vm167_vm1, %v209_v7, -inf }
 0x165   : > { %215 = vmax.xlane.f32.xlu0 %v214_v11 }
 0x17b   : > { %497 = vrot.lane.b32.xlu0 %v872_v2, %s824_s21 }
 0x1f2   : > { %v216_v14 = vpop.xlane.xlu0 %215 }
 0x1f3   : > { %v217_v15 = vsub.f32 %v209_v7, %v216_v14 }
 0x1f5   : > { %v218_v16 = vmul.f32 1.442695, %v217_v15 }
 0x1f6   : > { %v498_v28 = vpop.permute.xlu0 %497 }
 0x1f7   : > { %795 = vpow2.f32 %v218_v16  ;;  %v503_v30 = vsel %vm167_vm1, %v498_v28, 0 }
 0x201   : > { %v796_v17 = vpop.eup %795 }
 0x202   : > { %v220_v18 = vsel %vm167_vm1, %v796_v17, 0.0 }
 0x203   : > { %221 = vadd.xlane.f32.xlu1 %v220_v18 }
 0x214   : > { %275 = vrot.lane.b32.xlu1 %v872_v2, %s825_s22 }
 0x218   : > { %387 = vrot.lane.b32.xlu1 %v872_v2, %s826_s23 }
 0x21c   : > { %385 = vrot.lane.b32.xlu1 %v872_v2, %s827_s24 }
 0x220   : > { %495 = vrot.lane.b32.xlu1 %v872_v2, %s828_s25 }
 0x290   : > { %v222_v20 = vpop.xlane.xlu1 %221 }
 0x291   : > { %797 = vrcp.f32 %v222_v20 }
 0x294   : > { %v276_v23 = vpop.permute.xlu1 %275 }
 0x298   : > { %v388_v26 = vpop.permute.xlu1 %387 }
 0x299   : > { %v393_v27 = vsel %vm167_vm1, %v388_v26, 0 }
 0x29b   : > { %v798_v21 = vpop.eup %797 }
 0x29c   : > { %v224_v22 = vmul.f32 %v798_v21, %v796_v17  ;;  %v386_v29 = vpop.permute.xlu1 %385 }
 0x29e   : > { %v225_v24 = vpack.c.bf16 %v224_v22, %v224_v22 }
 0x2a0   : > { %731 = vmatmul.mubr.msk.bf16.vlgmr.msra.gmra.mrb[0].mxu1 %vm167_vm1, %v225_v24  ;;  %v496_v31 = vpop.permute.xlu1 %495 }
 0x2a1   : > { %735 = vmatpush3.bf16.xpose.msra.mxu1 %v283_v25  ;;  %736 = vmatprep.mubr.msk.bf16.mxu1 %vm820_vm0, %v819_v0 }
 0x2a2   : > { %746 = vmatprep.subr.bf16.mxu1 %v819_v0 }
 0x2a8   : > { %737 = vmatmul.mubr.msk.bf16.vlgmr.msra.gmra.mrb[4].mxu1 %vm167_vm1, %v276_v23 }
 0x2a9   : > { %747 = vmatpush3.bf16.xpose.msra.mxu1 %v393_v27  ;;  %748 = vmatprep.mubr.msk.bf16.mxu1 %vm820_vm0, %v819_v0 }
 0x2aa   : > { %758 = vmatprep.subr.bf16.mxu1 %v819_v0 }
 0x2b0   : > { %749 = vmatmul.mubr.msk.bf16.vlgmr.msra.gmra.mrb[8].mxu1 %vm167_vm1, %v386_v29 }
 0x2b1   : > { %759 = vmatpush3.bf16.xpose.msra.mxu1 %v503_v30  ;;  %760 = vmatprep.mubr.msk.bf16.mxu1 %vm820_vm0, %v819_v0 }
 0x2b8   : > { %761 = vmatmul.mubr.msk.bf16.vlgmr.msra.gmra.mrb[12].mxu1 %vm167_vm1, %v496_v31 }
 0x373   : > { %v913_v32 = vpop.f32.mrb[0].mxu1 }
 0x374   : > { %v732_v33 = vpop.f32.mrb[1].mxu1 }
 0x375   : > { %v272_v34 = vpop.f32.mrb[2].mxu1 }
 0x376   : > { %v733_v35 = vpop.f32.mrb[3].mxu1 }
 0x37b   : > { %v319_v36 = vpop.f32.mrb[4].mxu1 }
 0x37c   : > { %v320_v37 = vadd.f32 %v886_v5, %v319_v36  ;;  %v738_v38 = vpop.f32.mrb[5].mxu1 }
 0x37d   : > { %v322_v39 = vpop.f32.mrb[6].mxu1 }
 0x37e   : > { %v739_v40 = vpop.f32.mrb[7].mxu1  ;;  %v325_v41 = vsel %vm167_vm1, %v320_v37, -inf }
 0x37f   : > { %326 = vmax.xlane.f32.xlu1 %v325_v41 }
 0x383   : > { %v429_v42 = vpop.f32.mrb[8].mxu1 }
 0x384   : > { %v430_v43 = vadd.f32 %v886_v5, %v429_v42  ;;  %v750_v44 = vpop.f32.mrb[9].mxu1 }
 0x385   : > { %v432_v45 = vpop.f32.mrb[10].mxu1 }
 0x386   : > { %v435_v46 = vsel %vm167_vm1, %v430_v43, -inf  ;;  %v751_v47 = vpop.f32.mrb[11].mxu1 }
 0x387   : > { %436 = vmax.xlane.f32.xlu0 %v435_v46 }
 0x38b   : > { %v539_v48 = vpop.f32.mrb[12].mxu1 }
 0x38c   : > { %v540_v49 = vadd.f32 %v886_v5, %v539_v48  ;;  %v762_v50 = vpop.f32.mrb[13].mxu1 }
 0x38d   : > { %v542_v51 = vpop.f32.mrb[14].mxu1 }
 0x38e   : > { %v545_v52 = vsel %vm167_vm1, %v540_v49, -inf  ;;  %v763_v53 = vpop.f32.mrb[15].mxu1 }
 0x38f   : > { %546 = vmax.xlane.f32.xlu1 %v545_v52 }
 0x40c   : > { %v327_v54 = vpop.xlane.xlu1 %326 }
 0x40d   : > { %v328_v55 = vsub.f32 %v320_v37, %v327_v54 }
 0x40f   : > { %v329_v56 = vmul.f32 1.442695, %v328_v55 }
 0x411   : > { %799 = vpow2.f32 %v329_v56 }
 0x414   : > { %v437_v1 = vpop.xlane.xlu0 %436 }
 0x415   : > { %v438_v3 = vsub.f32 %v430_v43, %v437_v1 }
 0x417   : > { %v439_v4 = vmul.f32 1.442695, %v438_v3 }
 0x41b   : > { %v800_v57 = vpop.eup %799 }
 0x41c   : > { %v547_v58 = vpop.xlane.xlu1 %546  ;;  %v331_v59 = vsel %vm167_vm1, %v800_v57, 0.0 }
 0x41d   : > { %v548_v60 = vsub.f32 %v540_v49, %v547_v58  ;;  %332 = vadd.xlane.f32.xlu1 %v331_v59 }
 0x41f   : > { %v549_v61 = vmul.f32 1.442695, %v548_v60 }
 0x421   : > { %801 = vpow2.f32 %v549_v61 }
 0x422   : > { %803 = vpow2.f32 %v439_v4 }
 0x42b   : > { %v802_v62 = vpop.eup %801 }
 0x42c   : > { %v551_v63 = vsel %vm167_vm1, %v802_v62, 0.0  ;;  %v804_v5 = vpop.eup %803 }
 0x42d   : > { %552 = vadd.xlane.f32.xlu0 %v551_v63  ;;  %v441_v6 = vsel %vm167_vm1, %v804_v5, 0.0 }
 0x42e   : > { %337 = vrot.lane.b32.xlu1 %v872_v2, %s829_s26 }
 0x443   : > { %447 = vrot.lane.b32.xlu0 %v872_v2, %s830_s27 }
 0x452   : > { %442 = vadd.xlane.f32.xlu1 %v441_v6 }
 0x463   : > { %557 = vrot.lane.b32.xlu1 %v872_v2, %s831_s28 }
 0x4aa   : > { %v333_v7 = vpop.xlane.xlu1 %332 }
 0x4ab   : > { %805 = vrcp.f32 %v333_v7 }
 0x4ae   : > { %v338_v8 = vpop.permute.xlu1 %337 }
 0x4af   : > { %v343_v9 = vsel %vm231_vm2, %v338_v8, 0 }
 0x4b0   : > { %741 = vmatpush3.bf16.msra.mxu0 %v343_v9 }
 0x4b1   : > { %752 = vmatprep.subr.bf16.mxu0 %v819_v0 }
 0x4b5   : > { %v806_v10 = vpop.eup %805 }
 0x4b6   : > { %v335_v11 = vmul.f32 %v806_v10, %v800_v57 }
 0x4b8   : > { %v336_v12 = vpack.c.bf16 %v335_v11, %v335_v11 }
 0x4ba   : > { %743 = vmatmul.mubr.msk.bf16.vlgmr.msra.gmra.mrb[4].mxu0 %vm167_vm1, %v336_v12  ;;  %v553_v13 = vpop.xlane.xlu0 %552 }
 0x4bb   : > { %754 = vmatprep.mubr.msk.bf16.mxu0 %vm820_vm0, %v819_v0 }
 0x4be   : > { %v448_v14 = vpop.permute.xlu0 %447 }
 0x4bf   : > { %v453_v2 = vsel %vm231_vm2, %v448_v14, 0 }
 0x4c0   : > { %753 = vmatpush3.bf16.msra.mxu0 %v453_v2 }
 0x4c1   : > { %764 = vmatprep.subr.bf16.mxu0 %v819_v0 }
 0x4df   : > { %v443_v15 = vpop.xlane.xlu1 %442 }
 0x4e0   : > { %807 = vrcp.f32 %v443_v15 }
 0x4e1   : > { %809 = vrcp.f32 %v553_v13 }
 0x4e3   : > { %v558_v17 = vpop.permute.xlu1 %557 }
 0x4e4   : > { %v563_v19 = vsel %vm231_vm2, %v558_v17, 0 }
 0x4ea   : > { %v808_v16 = vpop.eup %807 }
 0x4eb   : > { %v445_v18 = vmul.f32 %v808_v16, %v804_v5  ;;  %v810_v21 = vpop.eup %809 }
 0x4ec   : > { %v555_v22 = vmul.f32 %v810_v21, %v802_v62 }
 0x4ed   : > { %v446_v20 = vpack.c.bf16 %v445_v18, %v445_v18 }
 0x4ee   : > { %v556_v23 = vpack.c.bf16 %v555_v22, %v555_v22 }
 0x4ef   : > { %755 = vmatmul.mubr.msk.bf16.vlgmr.msra.gmra.mrb[8].mxu0 %vm167_vm1, %v446_v20 }
 0x4f0   : > { %765 = vmatpush3.bf16.msra.mxu0 %v563_v19  ;;  %766 = vmatprep.mubr.msk.bf16.mxu0 %vm820_vm0, %v819_v0 }
 0x4f7   : > { %767 = vmatmul.mubr.msk.bf16.vlgmr.msra.gmra.mrb[12].mxu0 %vm167_vm1, %v556_v23 }
 0x58d   : > { %v379_v24 = vpop.f32.mrb[4].mxu0 }
 0x58e   : > { %606 = vrot.lane.b32.xlu1 %v379_v24, %s832_s29  ;;  %v744_v25 = vpop.f32.mrb[5].mxu0 }
 0x58f   : > { %v382_v26 = vpop.f32.mrb[6].mxu0 }
 0x590   : > { %v745_v27 = vpop.f32.mrb[7].mxu0 }
 0x5c2   : > { %v489_v28 = vpop.f32.mrb[8].mxu0 }
 0x5c3   : > { %610 = vrot.lane.b32.xlu0 %v489_v28, %s833_s30  ;;  %v756_v29 = vpop.f32.mrb[9].mxu0 }
 0x5c4   : > { %v492_v30 = vpop.f32.mrb[10].mxu0 }
 0x5c5   : > { %v757_v31 = vpop.f32.mrb[11].mxu0 }
 0x5ca   : > { %v599_v33 = vpop.f32.mrb[12].mxu0 }
 0x5cb   : > { %614 = vrot.lane.b32.xlu1 %v599_v33, %s834_s3  ;;  %v768_v0 = vpop.f32.mrb[13].mxu0 }
 0x5cc   : > { %v602_v34 = vpop.f32.mrb[14].mxu0 }
 0x5cd   : > { %v769_v35 = vpop.f32.mrb[15].mxu0 }
 0x600   : > { %v607_v36 = vpop.permute.xlu1 %606 }
 0x601   : > { %v617_v38 = vsel %vm167_vm1, %v913_v32, %v607_v36 }
 0x635   : > { %v611_v37 = vpop.permute.xlu0 %610 }
 0x636   : > { %v619_v39 = vsel %vm618_vm3, %v617_v38, %v611_v37 }
 0x63d   : > { %v615_v40 = vpop.permute.xlu1 %614 }
 0x63e   : > { %v621_v41 = vsel %vm620_vm4, %v619_v39, %v615_v40 }
 0x63f   : > { %v622_v42 = vpack.c.bf16 %v621_v41, %v621_v41 }
 0x641   : > { %624 = vst.msk [vmem:[%s152_s6] sm:$0xf] %vm623_vm5, %v622_v42 }
 0x642 PF: > { %s12_s9 = sadd.s32 1, %s817_s9  }
 0x643   : > { %p9_p4 = scmp.ge.s32.totalorder %s12_s9, 4  }
 0x645   :  { %11 = sbr.rel (!%p9_p4) target bundleno = 1 (0x1), region = 61 }

// kernel: trans_layer_forward.11
= control target key start
LH: loop header
LB: loop body
LE: loop exit
PB: predicated region body
PF: predicated region fallthrough
CT: control target
= control target key end

     0   :  { %v564_v1 = vmov 0.0   ;;  %vm565_vm0 = vmmov 0   ;;  %vm77_vm1 = vcmask 261120   ;;  %s747_s0 = inlined_call_operand.vmem [shape: f32[16,32], index: 0, kind: input, shape index: {}]   ;;  %s748_s1 = inlined_call_operand.vmem [shape: bf16[16,32], index: 1, kind: input, shape index: {}]   ;;  %s749_s2 = inlined_call_operand.vmem [shape: bf16[32,32], index: 2, kind: input, shape index: {}]   ;;  %s750_s3 = inlined_call_operand.vmem [shape: f32[1,32], index: 3, kind: input, shape index: {}]   ;;  %s751_s4 = inlined_call_operand.vmem [shape: f32[1,32], index: 4, kind: input, shape index: {}]   ;;  %s752_s5 = inlined_call_operand.vmem [shape: f32[1,32], index: 5, kind: input, shape index: {}]   ;;  %s753_s6 = inlined_call_operand.vmem [shape: bf16[32,128], index: 6, kind: input, shape index: {}]   ;;  %s754_s7 = inlined_call_operand.vmem [shape: f32[1,128], index: 7, kind: input, shape index: {}]   ;;  %s755_s8 = inlined_call_operand.vmem [shape: bf16[128,32], index: 8, kind: input, shape index: {}]   ;;  %s756_s9 = inlined_call_operand.vmem [shape: f32[1,32], index: 9, kind: input, shape index: {}]   ;;  %s757_s10 = inlined_call_operand.vmem [shape: f32[1,32], index: 10, kind: input, shape index: {}]   ;;  %s758_s11 = inlined_call_operand.vmem [shape: f32[1,32], index: 11, kind: input, shape index: {}]   ;;  %s759_s12 = inlined_call_operand.hbm [shape: f32[16,32], index: 12, kind: output, shape index: {}]  }
   0x1   :  { %v519_v0 = vld [vmem:[%s749_s2] sm:$0xff]   ;;  %478 = vmatprep.subr.bf16.mxu1 %v564_v1  ;;  %494 = vmatprep.subr.bf16.mxu0 %v564_v1  ;;  %v520_v2 = vld [vmem:[%s749_s2 + $0x8] sm:$0xff]   ;;  %173 = vst.msk [vmem:[#allocation3] sm:$0xff] %vm77_vm1, %v564_v1  ;;  %174 = vst.msk [vmem:[#allocation3 + $0x8] sm:$0xff] %vm77_vm1, %v564_v1 }
   0x2   :  { %479 = vmatpush3.bf16.msra.mxu1 %v519_v0  ;;  %482 = vmatprep.mubr.msk.bf16.mxu1 %vm565_vm0, %v564_v1  ;;  %v521_v3 = vld [vmem:[%s748_s1] sm:$0xff]  }
   0x3   :  { %480 = vmatprep.subr.bf16.mxu1 %v564_v1  ;;  %510 = vmatprep.mubr.msk.bf16.mxu0 %vm565_vm0, %v564_v1 }
   0x6   :  { %481 = vmatpush3.bf16.msra.mxu1 %v520_v2 }
   0x7   :  { %486 = vmatprep.subr.bf16.mxu1 %v564_v1 }
   0x9   :  { %483 = vmatmul.mubr.msk.bf16.vlgmr.msra.gmra.mrb[0].mxu1 %vm77_vm1, %v521_v3 }
   0xa   :  { %490 = vmatprep.mubr.msk.bf16.mxu1 %vm565_vm0, %v564_v1 }
   0xb   :  { %17 = vsyncpa [#allocation5], 0  ;;  %v441_v4 = vld [vmem:[%s750_s3] ss:$0 sm:$0xff]  ;;  %v123_v10 = vld [vmem:[%s747_s0 + $0x8] sm:$0xff]  ;;  %s566_s15 = smov [#allocation4]  }
   0xc   :  { %v122_v6 = vld [vmem:[%s747_s0] sm:$0xff]  ;;  %v523_v28 = vld [vmem:[%s753_s6 + $0x8] sm:$0xff]   ;;  %v526_v31 = vld [vmem:[%s755_s8 + $0x10] sm:$0xff]   ;;  %s430_s16 = sshll.u32 %s566_s15, 4  ;;  %s431_s16 = int_to_ptr.vmem [resolvable:$true] %s430_s16 }
   0xd   :  { %v522_v27 = vld [vmem:[%s753_s6] sm:$0xff]   ;;  %v525_v30 = vld [vmem:[%s755_s8 + $0x8] sm:$0xff]   ;;  %v527_v32 = vld [vmem:[%s755_s8 + $0x18] sm:$0xff]   ;;  %s540_s17 = scalar_lea.vmem %s431_s16, 256  ;;  %p545_p1 = scmp.lt.s32.totalorder %s431_s16, %s431_s16 }
   0xe   :  { %487 = vmatpush3.bf16.msra.mxu1 %v522_v27  ;;  %v524_v29 = vld [vmem:[%s755_s8] sm:$0xff]   ;;  %v529_v34 = vld [vmem:[%s755_s8 + $0x28] sm:$0xff]   ;;  %v530_v54 = vld [vmem:[%s755_s8 + $0x30] sm:$0xff]   ;;  %p541_p0 = scmp.ne.s32.totalorder %s431_s16, %s540_s17  ;;  %p546_p2 = scmp.lt.s32.totalorder %s540_s17, %s540_s17 }
   0xf   :  { %488 = vmatprep.subr.bf16.mxu1 %v564_v1  ;;  %495 = vmatpush3.bf16.msra.mxu0 %v524_v29  ;;  %v528_v33 = vld [vmem:[%s755_s8 + $0x20] sm:$0xff]   ;;  %v531_v55 = vld [vmem:[%s755_s8 + $0x38] sm:$0xff]  }
  0x10   :  { %496 = vmatprep.subr.bf16.mxu0 %v564_v1  ;;  %v446_v42 = vld [vmem:[%s751_s4] ss:$0 sm:$0xff]  ;;  %p547_p3 = por %p546_p2, %p545_p1 }
  0x11   :  { %v447_v44 = vld [vmem:[%s752_s5] ss:$0 sm:$0xff] }
  0x12   :  { %489 = vmatpush3.bf16.msra.mxu1 %v523_v28  ;;  %v448_v56 = vld [vmem:[%s754_s7] ss:$0 sm:$0xff]  ;;  %p548_p4 = pnand %p547_p3, %p541_p0 }
  0x13   :  { %497 = vmatpush3.bf16.msra.mxu0 %v525_v30 }
  0x14   :  { %498 = vmatprep.subr.bf16.mxu0 %v564_v1 }
  0x17   :  { %499 = vmatpush3.bf16.msra.mxu0 %v526_v31 }
  0x18   :  { %500 = vmatprep.subr.bf16.mxu0 %v564_v1 }
  0x1b   :  { %501 = vmatpush3.bf16.msra.mxu0 %v527_v32 }
  0x1c   :  { %502 = vmatprep.subr.bf16.mxu0 %v564_v1 }
  0x1f   :  { %503 = vmatpush3.bf16.msra.mxu0 %v528_v33 }
  0x20   :  { %504 = vmatprep.subr.bf16.mxu0 %v564_v1 }
  0x23   :  { %505 = vmatpush3.bf16.msra.mxu0 %v529_v34 }
  0x24   :  { %506 = vmatprep.subr.bf16.mxu0 %v564_v1 }
  0x27   :  { %507 = vmatpush3.bf16.msra.mxu0 %v530_v54 }
  0x28   :  { %508 = vmatprep.subr.bf16.mxu0 %v564_v1  ;;  %v248_v1 = vld [vmem:[#allocation3] sm:$0xff] }
  0x2b   :  { %509 = vmatpush3.bf16.msra.mxu0 %v531_v55 }
  0xdc   :  { %v115_v5 = vpop.f32.mrb[0].mxu1 }
  0xdd   :  { %v116_v7 = vadd.f32 %v441_v4, %v115_v5  ;;  %v484_v8 = vpop.f32.mrb[1].mxu1 }
  0xde   :  { %v118_v9 = vpop.f32.mrb[2].mxu1 }
  0xdf   :  { %v119_v11 = vadd.f32 %v441_v4, %v118_v9  ;;  %v485_v12 = vpop.f32.mrb[3].mxu1  ;;  %v124_v13 = vadd.f32 %v122_v6, %v116_v7  ;;  %v249_v4 = vld [vmem:[#allocation3 + $0x8] sm:$0xff] }
  0xe1   :  { %v126_v14 = vsel %vm77_vm1, %v124_v13, 0.0  ;;  %v125_v15 = vadd.f32 %v123_v10, %v119_v11  ;;  %v460_v11 = vld [vmem:[%s756_s9] ss:$0 sm:$0xff] }
  0xe2   :  { %127 = vadd.xlane.f32.xlu0 %v126_v14 }
  0xe3   :  { %v129_v16 = vsel %vm77_vm1, %v125_v15, 0.0 }
  0xe6   :  { %130 = vadd.xlane.f32.xlu0 %v129_v16 }
 0x16f   :  { %v128_v17 = vpop.xlane.xlu0 %127 }
 0x170   :  { %v133_v18 = vmul.f32 0.03125, %v128_v17 }
 0x172   :  { %v135_v19 = vsub.f32 %v124_v13, %v133_v18 }
 0x173   :  { %v131_v20 = vpop.xlane.xlu0 %130 }
 0x174   :  { %v134_v21 = vmul.f32 0.03125, %v131_v20  ;;  %v137_v22 = vmul.f32 %v135_v19, %v135_v19 }
 0x176   :  { %v136_v23 = vsub.f32 %v125_v15, %v134_v21  ;;  %v139_v24 = vsel %vm77_vm1, %v137_v22, 0.0 }
 0x177   :  { %140 = vadd.xlane.f32.xlu1 %v139_v24 }
 0x178   :  { %v138_v25 = vmul.f32 %v136_v23, %v136_v23 }
 0x17a   :  { %v142_v26 = vsel %vm77_vm1, %v138_v25, 0.0 }
 0x17b   :  { %143 = vadd.xlane.f32.xlu1 %v142_v26 }
 0x204   :  { %v141_v35 = vpop.xlane.xlu1 %140 }
 0x205   :  { %v145_v36 = vmul.f32 0.03125, %v141_v35 }
 0x207   :  { %v147_v37 = vadd.f32 1e-05, %v145_v36  ;;  %v461_v36 = vld [vmem:[%s757_s10] ss:$0 sm:$0xff] }
 0x208   :  { %v144_v38 = vpop.xlane.xlu1 %143 }
 0x209   :  { %532 = vrsqrt.f32 %v147_v37  ;;  %v146_v39 = vmul.f32 0.03125, %v144_v38 }
 0x20b   :  { %v148_v40 = vadd.f32 1e-05, %v146_v39  ;;  %v462_v39 = vld [vmem:[%s758_s11] ss:$0 sm:$0xff] }
 0x20d   :  { %534 = vrsqrt.f32 %v148_v40 }
 0x213   :  { %v533_v41 = vpop.eup %532 }
 0x214   :  { %v151_v43 = vmul.f32 %v533_v41, %v135_v19 }
 0x216   :  { %v160_v45 = vmul.f32 %v446_v42, %v151_v43 }
 0x217   :  { %v535_v46 = vpop.eup %534 }
 0x218   :  { %v169_v47 = vadd.f32 %v447_v44, %v160_v45  ;;  %v152_v48 = vmul.f32 %v535_v46, %v136_v23 }
 0x21a   :  { %171 = vst.msk [vmem:[#allocation2] sm:$0xff] %vm77_vm1, %v169_v47  ;;  %v161_v49 = vmul.f32 %v446_v42, %v152_v48 }
 0x21c   :  { %v170_v50 = vadd.f32 %v447_v44, %v161_v49 }
 0x21e   :  { %172 = vst.msk [vmem:[#allocation2 + $0x8] sm:$0xff] %vm77_vm1, %v170_v50 }
 0x221   :  { %v175_v51 = vld [vmem:[#allocation2] sm:$0xff] }
 0x225   :  { %v176_v52 = vld [vmem:[#allocation2 + $0x8] sm:$0xff] }
 0x226   :  { %v177_v53 = vpack.c.bf16 %v176_v52, %v175_v51 }
 0x228   :  { %491 = vmatmul.mubr.msk.bf16.vlgmr.msra.gmra.mrb[4].mxu1 %vm77_vm1, %v177_v53 }
 0x2fb   :  { %v239_v57 = vpop.f32.mrb[4].mxu1 }
 0x2fc   :  { %v240_v58 = vadd.f32 %v448_v56, %v239_v57  ;;  %v492_v59 = vpop.f32.mrb[5].mxu1 }
 0x2fd   :  { %v242_v60 = vpop.f32.mrb[6].mxu1 }
 0x2fe   :  { %v243_v61 = vadd.f32 %v448_v56, %v242_v60  ;;  %v493_v62 = vpop.f32.mrb[7].mxu1  ;;  %v246_v63 = vmax.f32 %v240_v58, 0.0 }
 0x300   :  { %v247_v0 = vmax.f32 %v243_v61, 0.0 }
 0x302   :  { %v250_v2 = vpack.c.bf16 %v247_v0, %v246_v63 }
 0x304   :  { %511 = vmatmul.mubr.bf16.vlgmr.msra.gmra.mrb[0].mxu0 %v250_v2 }
 0x3d7   :  { %v349_v3 = vpop.f32.mrb[0].mxu0 }
 0x3d8   :  { %v356_v5 = vadd.f32 %v349_v3, %v248_v1  ;;  %v512_v6 = vpop.f32.mrb[1].mxu0 }
 0x3d9   :  { %v352_v7 = vpop.f32.mrb[2].mxu0 }
 0x3da   :  { %358 = vst.msk [vmem:[#allocation3] sm:$0xff] %vm77_vm1, %v356_v5  ;;  %v357_v8 = vadd.f32 %v352_v7, %v249_v4  ;;  %v513_v9 = vpop.f32.mrb[3].mxu0 }
 0x3dc   :  { %359 = vst.msk [vmem:[#allocation3 + $0x8] sm:$0xff] %vm77_vm1, %v357_v8 }
 0x3e1   :  { %v365_v10 = vld [vmem:[#allocation3] sm:$0xff] }
 0x3e2   :  { %v367_v12 = vadd.f32 %v365_v10, %v175_v51 }
 0x3e3   :  { %v366_v13 = vld [vmem:[#allocation3 + $0x8] sm:$0xff] }
 0x3e4   :  { %v376_v14 = vadd.f32 %v460_v11, %v367_v12  ;;  %v368_v15 = vadd.f32 %v366_v13, %v176_v52 }
 0x3e6   :  { %v378_v16 = vsel %vm77_vm1, %v376_v14, 0.0  ;;  %v377_v17 = vadd.f32 %v460_v11, %v368_v15 }
 0x3e7   :  { %379 = vadd.xlane.f32.xlu0 %v378_v16 }
 0x3e8   :  { %v381_v18 = vsel %vm77_vm1, %v377_v17, 0.0 }
 0x3e9   :  { %382 = vadd.xlane.f32.xlu1 %v381_v18 }
 0x474   :  { %v380_v19 = vpop.xlane.xlu0 %379 }
 0x475   :  { %v385_v20 = vmul.f32 0.03125, %v380_v19 }
 0x476   :  { %v383_v21 = vpop.xlane.xlu1 %382 }
 0x477   :  { %v387_v22 = vsub.f32 %v376_v14, %v385_v20  ;;  %v386_v23 = vmul.f32 0.03125, %v383_v21 }
 0x479   :  { %v388_v24 = vsub.f32 %v377_v17, %v386_v23  ;;  %v389_v25 = vmul.f32 %v387_v22, %v387_v22 }
 0x47b   :  { %v391_v26 = vsel %vm77_vm1, %v389_v25, 0.0  ;;  %v390_v27 = vmul.f32 %v388_v24, %v388_v24 }
 0x47c   :  { %392 = vadd.xlane.f32.xlu0 %v391_v26 }
 0x47d   :  { %v394_v28 = vsel %vm77_vm1, %v390_v27, 0.0 }
 0x47e   :  { %395 = vadd.xlane.f32.xlu1 %v394_v28 }
 0x509   :  { %v393_v29 = vpop.xlane.xlu0 %392 }
 0x50a   :  { %v397_v30 = vmul.f32 0.03125, %v393_v29 }
 0x50b   :  { %v396_v31 = vpop.xlane.xlu1 %395 }
 0x50c   :  { %v399_v32 = vadd.f32 1e-05, %v397_v30  ;;  %v398_v33 = vmul.f32 0.03125, %v396_v31 }
 0x50e   :  { %536 = vrsqrt.f32 %v399_v32  ;;  %v400_v34 = vadd.f32 1e-05, %v398_v33 }
 0x510   :  { %538 = vrsqrt.f32 %v400_v34 }
 0x518   :  { %v537_v35 = vpop.eup %536 }
 0x519   :  { %v403_v37 = vmul.f32 %v537_v35, %v387_v22 }
 0x51a   :  { %v539_v38 = vpop.eup %538 }
 0x51b   :  { %v404_v40 = vmul.f32 %v539_v38, %v388_v24  ;;  %v412_v41 = vmul.f32 %v461_v36, %v403_v37 }
 0x51d   :  { %v413_v42 = vmul.f32 %v461_v36, %v404_v40  ;;  %v421_v43 = vadd.f32 %v462_v39, %v412_v41 }
 0x51f   :  { %v422_v44 = vadd.f32 %v462_v39, %v413_v42  ;;  %423 = vst.msk [vmem:[#allocation4] sm:$0xff] %vm77_vm1, %v421_v43 }
 0x521   :  { %424 = vst.msk [vmem:[#allocation4 + $0x8] sm:$0xff] %vm77_vm1, %v422_v44 }
 0x522   :  { %551 = shalt.err (!%p548_p4)
}
 0x523   :  { %s552_s18 = scalar_lea.hbm %s759_s12, 256 }
 0x524   :  { %p553_p5 = scmp.ne.s32.totalorder %s759_s12, %s552_s18  ;;  %p556_p6 = scmp.lt.u32.totalorder %s552_s18, %s759_s12 }
 0x526   :  { %p558_p7 = pnand %p556_p6, %p553_p5 }
 0x528   :  { %561 = shalt.err (!%p558_p7)
}
 0x529   :  { %s567_s22 = smov 128   ;;  %s568_s23 = smov 8  }
 0x52a   :  { %436 = dma.vmem_to_hbm [thread:$0]  %s431_s16, 256, %s759_s12, [#allocation5], %s567_s22, %s567_s22, %s568_s23  }
 0x52b   :  { %562 = dma.done.wait [#allocation5], 256  }
 0x52c   :  { %563 = vsyncadd [#allocation5], 4294967040 }
 0x52d   :  { %440 = vsyncpa [#allocation5], 1 }

// kernel: trans_layer_forward.8
= control target key start
LH: loop header
LB: loop body
LE: loop exit
PB: predicated region body
PF: predicated region fallthrough
CT: control target
= control target key end

     0   :  { %vm76_vm0 = vcmask 261120   ;;  %v524_v0 = vmov 0.0   ;;  %vm525_vm1 = vmmov 0   ;;  %s698_s2 = inlined_call_operand.vmem [shape: bf16[32,32], index: 2, kind: input, shape index: {}]   ;;  %s699_s1 = inlined_call_operand.vmem [shape: bf16[16,32], index: 1, kind: input, shape index: {}]   ;;  %s700_s3 = inlined_call_operand.vmem [shape: f32[1,32], index: 3, kind: input, shape index: {}]   ;;  %s701_s0 = inlined_call_operand.vmem [shape: f32[16,32], index: 0, kind: input, shape index: {}]   ;;  %s702_s6 = inlined_call_operand.vmem [shape: bf16[32,128], index: 6, kind: input, shape index: {}]   ;;  %s703_s8 = inlined_call_operand.vmem [shape: bf16[128,32], index: 8, kind: input, shape index: {}]   ;;  %s704_s4 = inlined_call_operand.vmem [shape: f32[1,32], index: 4, kind: input, shape index: {}]   ;;  %s705_s5 = inlined_call_operand.vmem [shape: f32[1,32], index: 5, kind: input, shape index: {}]   ;;  %s706_s7 = inlined_call_operand.vmem [shape: f32[1,128], index: 7, kind: input, shape index: {}]   ;;  %s707_s9 = inlined_call_operand.vmem [shape: f32[1,32], index: 9, kind: input, shape index: {}]   ;;  %s708_s10 = inlined_call_operand.vmem [shape: f32[1,32], index: 10, kind: input, shape index: {}]   ;;  %s709_s11 = inlined_call_operand.vmem [shape: f32[1,32], index: 11, kind: input, shape index: {}]   ;;  %s710_s12 = inlined_call_operand.vmem [shape: f32[16,32], index: 12, kind: output, shape index: {}]  }
   0x1   :  { %465 = vmatprep.subr.bf16.mxu1 %v524_v0  ;;  %v503_v1 = vld [vmem:[%s698_s2] sm:$0xff]   ;;  %469 = vmatprep.mubr.msk.bf16.mxu1 %vm525_vm1, %v524_v0  ;;  %172 = vst.msk [vmem:[#allocation3] sm:$0xff] %vm76_vm0, %v524_v0  ;;  %173 = vst.msk [vmem:[#allocation3 + $0x8] sm:$0xff] %vm76_vm0, %v524_v0  ;;  %v504_v2 = vld [vmem:[%s698_s2 + $0x8] sm:$0xff]  }
   0x2   :  { %481 = vmatprep.subr.bf16.mxu0 %v524_v0  ;;  %497 = vmatprep.mubr.msk.bf16.mxu0 %vm525_vm1, %v524_v0  ;;  %v505_v3 = vld [vmem:[%s699_s1] sm:$0xff]   ;;  %v122_v10 = vld [vmem:[%s701_s0 + $0x8] sm:$0xff]  ;;  %v510_v31 = vld [vmem:[%s703_s8 + $0x10] sm:$0xff]  }
   0x3   :  { %466 = vmatpush3.bf16.msra.mxu1 %v503_v1  ;;  %v428_v4 = vld [vmem:[%s700_s3] ss:$0 sm:$0xff]  ;;  %v507_v28 = vld [vmem:[%s702_s6 + $0x8] sm:$0xff]   ;;  %v511_v32 = vld [vmem:[%s703_s8 + $0x18] sm:$0xff]  }
   0x4   :  { %467 = vmatprep.subr.bf16.mxu1 %v524_v0  ;;  %v121_v6 = vld [vmem:[%s701_s0] sm:$0xff]  ;;  %v509_v30 = vld [vmem:[%s703_s8 + $0x8] sm:$0xff]   ;;  %v514_v54 = vld [vmem:[%s703_s8 + $0x30] sm:$0xff]  }
   0x5   :  { %v506_v27 = vld [vmem:[%s702_s6] sm:$0xff]   ;;  %v513_v34 = vld [vmem:[%s703_s8 + $0x28] sm:$0xff]   ;;  %v515_v55 = vld [vmem:[%s703_s8 + $0x38] sm:$0xff]  }
   0x6   :  { %v508_v29 = vld [vmem:[%s703_s8] sm:$0xff]  }
   0x7   :  { %468 = vmatpush3.bf16.msra.mxu1 %v504_v2  ;;  %482 = vmatpush3.bf16.msra.mxu0 %v508_v29  ;;  %v512_v33 = vld [vmem:[%s703_s8 + $0x20] sm:$0xff]  }
   0x8   :  { %473 = vmatprep.subr.bf16.mxu1 %v524_v0  ;;  %483 = vmatprep.subr.bf16.mxu0 %v524_v0  ;;  %v433_v42 = vld [vmem:[%s704_s4] ss:$0 sm:$0xff] }
   0x9   :  { %v434_v44 = vld [vmem:[%s705_s5] ss:$0 sm:$0xff] }
   0xa   :  { %470 = vmatmul.mubr.msk.bf16.vlgmr.msra.gmra.mrb[0].mxu1 %vm76_vm0, %v505_v3  ;;  %v435_v56 = vld [vmem:[%s706_s7] ss:$0 sm:$0xff] }
   0xb   :  { %477 = vmatprep.mubr.msk.bf16.mxu1 %vm525_vm1, %v524_v0  ;;  %474 = vmatpush3.bf16.msra.mxu1 %v506_v27 }
   0xc   :  { %475 = vmatprep.subr.bf16.mxu1 %v524_v0  ;;  %484 = vmatpush3.bf16.msra.mxu0 %v509_v30 }
   0xd   :  { %485 = vmatprep.subr.bf16.mxu0 %v524_v0 }
   0xf   :  { %476 = vmatpush3.bf16.msra.mxu1 %v507_v28 }
  0x10   :  { %486 = vmatpush3.bf16.msra.mxu0 %v510_v31 }
  0x11   :  { %487 = vmatprep.subr.bf16.mxu0 %v524_v0 }
  0x14   :  { %488 = vmatpush3.bf16.msra.mxu0 %v511_v32 }
  0x15   :  { %489 = vmatprep.subr.bf16.mxu0 %v524_v0 }
  0x18   :  { %490 = vmatpush3.bf16.msra.mxu0 %v512_v33 }
  0x19   :  { %491 = vmatprep.subr.bf16.mxu0 %v524_v0 }
  0x1c   :  { %492 = vmatpush3.bf16.msra.mxu0 %v513_v34 }
  0x1d   :  { %493 = vmatprep.subr.bf16.mxu0 %v524_v0 }
  0x20   :  { %494 = vmatpush3.bf16.msra.mxu0 %v514_v54 }
  0x21   :  { %495 = vmatprep.subr.bf16.mxu0 %v524_v0  ;;  %v247_v0 = vld [vmem:[#allocation3] sm:$0xff] }
  0x24   :  { %496 = vmatpush3.bf16.msra.mxu0 %v515_v55 }
  0xdd   :  { %v114_v5 = vpop.f32.mrb[0].mxu1 }
  0xde   :  { %v115_v7 = vadd.f32 %v428_v4, %v114_v5  ;;  %v471_v8 = vpop.f32.mrb[1].mxu1 }
  0xdf   :  { %v117_v9 = vpop.f32.mrb[2].mxu1 }
  0xe0   :  { %v118_v11 = vadd.f32 %v428_v4, %v117_v9  ;;  %v472_v12 = vpop.f32.mrb[3].mxu1  ;;  %v123_v13 = vadd.f32 %v121_v6, %v115_v7  ;;  %v248_v4 = vld [vmem:[#allocation3 + $0x8] sm:$0xff] }
  0xe2   :  { %v125_v14 = vsel %vm76_vm0, %v123_v13, 0.0  ;;  %v124_v15 = vadd.f32 %v122_v10, %v118_v11  ;;  %v447_v11 = vld [vmem:[%s707_s9] ss:$0 sm:$0xff] }
  0xe3   :  { %126 = vadd.xlane.f32.xlu0 %v125_v14 }
  0xe4   :  { %v128_v16 = vsel %vm76_vm0, %v124_v15, 0.0 }
  0xe7   :  { %129 = vadd.xlane.f32.xlu0 %v128_v16 }
 0x170   :  { %v127_v17 = vpop.xlane.xlu0 %126 }
 0x171   :  { %v132_v18 = vmul.f32 0.03125, %v127_v17 }
 0x173   :  { %v134_v19 = vsub.f32 %v123_v13, %v132_v18 }
 0x174   :  { %v130_v20 = vpop.xlane.xlu0 %129 }
 0x175   :  { %v133_v21 = vmul.f32 0.03125, %v130_v20  ;;  %v136_v22 = vmul.f32 %v134_v19, %v134_v19 }
 0x177   :  { %v135_v23 = vsub.f32 %v124_v15, %v133_v21  ;;  %v138_v24 = vsel %vm76_vm0, %v136_v22, 0.0 }
 0x178   :  { %139 = vadd.xlane.f32.xlu1 %v138_v24 }
 0x179   :  { %v137_v25 = vmul.f32 %v135_v23, %v135_v23 }
 0x17b   :  { %v141_v26 = vsel %vm76_vm0, %v137_v25, 0.0 }
 0x17c   :  { %142 = vadd.xlane.f32.xlu1 %v141_v26 }
 0x205   :  { %v140_v35 = vpop.xlane.xlu1 %139 }
 0x206   :  { %v144_v36 = vmul.f32 0.03125, %v140_v35 }
 0x208   :  { %v146_v37 = vadd.f32 1e-05, %v144_v36  ;;  %v448_v36 = vld [vmem:[%s708_s10] ss:$0 sm:$0xff] }
 0x209   :  { %v143_v38 = vpop.xlane.xlu1 %142 }
 0x20a   :  { %516 = vrsqrt.f32 %v146_v37  ;;  %v145_v39 = vmul.f32 0.03125, %v143_v38 }
 0x20c   :  { %v147_v40 = vadd.f32 1e-05, %v145_v39  ;;  %v449_v39 = vld [vmem:[%s709_s11] ss:$0 sm:$0xff] }
 0x20e   :  { %518 = vrsqrt.f32 %v147_v40 }
 0x214   :  { %v517_v41 = vpop.eup %516 }
 0x215   :  { %v150_v43 = vmul.f32 %v517_v41, %v134_v19 }
 0x217   :  { %v159_v45 = vmul.f32 %v433_v42, %v150_v43 }
 0x218   :  { %v519_v46 = vpop.eup %518 }
 0x219   :  { %v168_v47 = vadd.f32 %v434_v44, %v159_v45  ;;  %v151_v48 = vmul.f32 %v519_v46, %v135_v23 }
 0x21b   :  { %170 = vst.msk [vmem:[#allocation2] sm:$0xff] %vm76_vm0, %v168_v47  ;;  %v160_v49 = vmul.f32 %v433_v42, %v151_v48 }
 0x21d   :  { %v169_v50 = vadd.f32 %v434_v44, %v160_v49 }
 0x21f   :  { %171 = vst.msk [vmem:[#allocation2 + $0x8] sm:$0xff] %vm76_vm0, %v169_v50 }
 0x222   :  { %v174_v51 = vld [vmem:[#allocation2] sm:$0xff] }
 0x226   :  { %v175_v52 = vld [vmem:[#allocation2 + $0x8] sm:$0xff] }
 0x227   :  { %v176_v53 = vpack.c.bf16 %v175_v52, %v174_v51 }
 0x229   :  { %478 = vmatmul.mubr.msk.bf16.vlgmr.msra.gmra.mrb[4].mxu1 %vm76_vm0, %v176_v53 }
 0x2fc   :  { %v238_v57 = vpop.f32.mrb[4].mxu1 }
 0x2fd   :  { %v239_v58 = vadd.f32 %v435_v56, %v238_v57  ;;  %v479_v59 = vpop.f32.mrb[5].mxu1 }
 0x2fe   :  { %v241_v60 = vpop.f32.mrb[6].mxu1 }
 0x2ff   :  { %v242_v61 = vadd.f32 %v435_v56, %v241_v60  ;;  %v480_v62 = vpop.f32.mrb[7].mxu1  ;;  %v245_v63 = vmax.f32 %v239_v58, 0.0 }
 0x301   :  { %v246_v1 = vmax.f32 %v242_v61, 0.0 }
 0x303   :  { %v249_v2 = vpack.c.bf16 %v246_v1, %v245_v63 }
 0x305   :  { %498 = vmatmul.mubr.bf16.vlgmr.msra.gmra.mrb[0].mxu0 %v249_v2 }
 0x3d8   :  { %v348_v3 = vpop.f32.mrb[0].mxu0 }
 0x3d9   :  { %v355_v5 = vadd.f32 %v348_v3, %v247_v0  ;;  %v499_v6 = vpop.f32.mrb[1].mxu0 }
 0x3da   :  { %v351_v7 = vpop.f32.mrb[2].mxu0 }
 0x3db   :  { %357 = vst.msk [vmem:[#allocation3] sm:$0xff] %vm76_vm0, %v355_v5  ;;  %v356_v8 = vadd.f32 %v351_v7, %v248_v4  ;;  %v500_v9 = vpop.f32.mrb[3].mxu0 }
 0x3dd   :  { %358 = vst.msk [vmem:[#allocation3 + $0x8] sm:$0xff] %vm76_vm0, %v356_v8 }
 0x3e2   :  { %v364_v10 = vld [vmem:[#allocation3] sm:$0xff] }
 0x3e3   :  { %v366_v12 = vadd.f32 %v364_v10, %v174_v51 }
 0x3e4   :  { %v365_v13 = vld [vmem:[#allocation3 + $0x8] sm:$0xff] }
 0x3e5   :  { %v375_v14 = vadd.f32 %v447_v11, %v366_v12  ;;  %v367_v15 = vadd.f32 %v365_v13, %v175_v52 }
 0x3e7   :  { %v377_v16 = vsel %vm76_vm0, %v375_v14, 0.0  ;;  %v376_v17 = vadd.f32 %v447_v11, %v367_v15 }
 0x3e8   :  { %378 = vadd.xlane.f32.xlu0 %v377_v16 }
 0x3e9   :  { %v380_v18 = vsel %vm76_vm0, %v376_v17, 0.0 }
 0x3ea   :  { %381 = vadd.xlane.f32.xlu1 %v380_v18 }
 0x475   :  { %v379_v19 = vpop.xlane.xlu0 %378 }
 0x476   :  { %v384_v20 = vmul.f32 0.03125, %v379_v19 }
 0x477   :  { %v382_v21 = vpop.xlane.xlu1 %381 }
 0x478   :  { %v386_v22 = vsub.f32 %v375_v14, %v384_v20  ;;  %v385_v23 = vmul.f32 0.03125, %v382_v21 }
 0x47a   :  { %v387_v24 = vsub.f32 %v376_v17, %v385_v23  ;;  %v388_v25 = vmul.f32 %v386_v22, %v386_v22 }
 0x47c   :  { %v390_v26 = vsel %vm76_vm0, %v388_v25, 0.0  ;;  %v389_v27 = vmul.f32 %v387_v24, %v387_v24 }
 0x47d   :  { %391 = vadd.xlane.f32.xlu0 %v390_v26 }
 0x47e   :  { %v393_v28 = vsel %vm76_vm0, %v389_v27, 0.0 }
 0x47f   :  { %394 = vadd.xlane.f32.xlu1 %v393_v28 }
 0x50a   :  { %v392_v29 = vpop.xlane.xlu0 %391 }
 0x50b   :  { %v396_v30 = vmul.f32 0.03125, %v392_v29 }
 0x50c   :  { %v395_v31 = vpop.xlane.xlu1 %394 }
 0x50d   :  { %v398_v32 = vadd.f32 1e-05, %v396_v30  ;;  %v397_v33 = vmul.f32 0.03125, %v395_v31 }
 0x50f   :  { %520 = vrsqrt.f32 %v398_v32  ;;  %v399_v34 = vadd.f32 1e-05, %v397_v33 }
 0x511   :  { %522 = vrsqrt.f32 %v399_v34 }
 0x519   :  { %v521_v35 = vpop.eup %520 }
 0x51a   :  { %v402_v37 = vmul.f32 %v521_v35, %v386_v22 }
 0x51b   :  { %v523_v38 = vpop.eup %522 }
 0x51c   :  { %v411_v40 = vmul.f32 %v448_v36, %v402_v37  ;;  %v403_v41 = vmul.f32 %v523_v38, %v387_v24 }
 0x51e   :  { %v420_v42 = vadd.f32 %v449_v39, %v411_v40  ;;  %v412_v43 = vmul.f32 %v448_v36, %v403_v41 }
 0x520   :  { %422 = vst.msk [vmem:[%s710_s12] sm:$0xff] %vm76_vm0, %v420_v42  ;;  %v421_v44 = vadd.f32 %v449_v39, %v412_v43 }
 0x522   :  { %423 = vst.msk [vmem:[%s710_s12 + $0x8] sm:$0xff] %vm76_vm0, %v421_v44 }

</bundles_post_ra>
